<compile_context>
chip_gen: v7x
topology: tpu7x:2x2x1
jax: 0.10.0
libtpu: 0.0.40
codegen_flags: <defaults>
</compile_context>

<pallas_src>
import functools

import jax
import jax.numpy as jnp
from jax import lax
from jax.experimental import pallas as pl
from jax.experimental.pallas import tpu as pltpu

EPS = 1e-5
NEG = -1e30                      # -inf stand-in for maxpool padding
MXU_DTYPE = jnp.bfloat16         # MXU operand dtype; BN/affine math stays f32
VMEM_LIMIT = 32 * 1024 * 1024    # explicit scoped-VMEM budget (re-derive per gen)

# TODO(synk): BatchNorm1d running_mean/running_var buffer updates (momentum,
# unbiased variance) are training-time side effects and are not emitted; only
# the normalization path needed for the forward output is computed.


# ----------------------------------------------------------------- helpers
def _shift_l(v, off, lpos, L, fill):
    """out[r] = v[r + off] if that row stays inside the same sample, else fill.

    Rows are n-major (r = n*L + l) and tiles hold whole samples, so a row roll
    plus a hoisted l-index mask implements the conv/pool L-shift with zero/NEG
    padding and never crosses a tile boundary.  (jnp.roll with a static shift
    lowers to two in-VMEM slices here; on 128-lane-aligned production widths
    this is the pltpu.roll sublane rotation suggested in the perf review.)
    """
    if off == 0:
        return v
    rolled = jnp.roll(v, -off, axis=0)
    if off > 0:
        valid = lpos < (L - off)
    else:
        valid = lpos >= (-off)
    return jnp.where(valid, rolled, jnp.array(fill, v.dtype))


# ----------------------------------------------------------------- kernels
def _stats_a_kernel(x_ref, wa_ref, sa_ref):
    """Pass 1: per-channel sum / sum-of-squares of the three sibling 1x1 convs
    (branch1 | branch2-reduce | branch3-reduce), accumulated over row tiles."""
    @pl.when(pl.program_id(0) == 0)
    def _init():
        sa_ref[...] = jnp.zeros_like(sa_ref)

    z = jnp.dot(x_ref[...], wa_ref[...], preferred_element_type=jnp.float32)
    sa_ref[0:1, :] += jnp.sum(z, axis=0, keepdims=True)      # single traversal
    sa_ref[1:2, :] += jnp.sum(z * z, axis=0, keepdims=True)  # -> E[y], E[y^2]


def _stage_b_kernel(x_ref, wa_ref, affa_ref, w3_ref, w5_ref, w4_ref,
                    ab_ref, sb_ref, *, L, dims):
    """Pass 2: recompute stage A with folded BN+ReLU, write branch1 columns,
    compute pre-BN branch2/3/4 activations (per-tap matmuls + pool), write them
    as direct column stores, and accumulate stage-B BN statistics."""
    out1, red, out3, out5, outp = dims

    @pl.when(pl.program_id(0) == 0)
    def _init():
        sb_ref[...] = jnp.zeros_like(sb_ref)

    x = x_ref[...]                              # (TR, Cin) MXU dtype, n-major
    TR, Cin = x.shape
    # hoisted row -> l-position iota, reused by every shifted tap / pool mask
    lpos = lax.broadcasted_iota(jnp.int32, (TR, 1), 0) % L

    # ---- stage A recompute: stacked 1x1 convs + folded BN scale/shift + ReLU
    z_a = jnp.dot(x, wa_ref[...], preferred_element_type=jnp.float32)
    a = jnp.maximum(z_a * affa_ref[0:1, :] + affa_ref[1:2, :], 0.0)

    # branch1 is final after stage A -> store its columns directly (no concat)
    ab_ref[:, 0:out1] = a[:, 0:out1]

    t2 = a[:, out1:out1 + red].astype(x.dtype)            # branch2 reduce
    t3 = a[:, out1 + red:out1 + 2 * red].astype(x.dtype)  # branch3 reduce

    # ---- K-tap convs as per-tap accumulating matmuls (no im2col concat, no
    # ---- block-diagonal zero weights)
    def tap_conv(t, w_ref, k):
        h = k // 2
        acc = jnp.dot(t, w_ref[h], preferred_element_type=jnp.float32)
        for off in range(-h, h + 1):
            if off == 0:
                continue
            tap = _shift_l(t, off, lpos, L, 0.0)
            acc = acc + jnp.dot(tap, w_ref[off + h],
                                preferred_element_type=jnp.float32)
        return acc

    y3 = tap_conv(t2, w3_ref, 3)                # (TR, out3) f32, pre-BN
    y5 = tap_conv(t3, w5_ref, 5)                # (TR, out5) f32, pre-BN

    # ---- MaxPool2d(3, stride=1, pad=1) over the (C, L) plane of each sample
    # channel-direction 3-window max via roll + lane-index mask
    cpos = lax.broadcasted_iota(jnp.int32, (1, Cin), 1)
    neg = jnp.array(NEG, x.dtype)
    m_c = jnp.maximum(x, jnp.where(cpos >= 1, jnp.roll(x, 1, axis=1), neg))
    m_c = jnp.maximum(m_c, jnp.where(cpos < Cin - 1,
                                     jnp.roll(x, -1, axis=1), neg))
    # L-direction 3-window max via roll + l-index mask
    m_p = jnp.maximum(jnp.maximum(m_c, _shift_l(m_c, -1, lpos, L, NEG)),
                      _shift_l(m_c, 1, lpos, L, NEG))
    yp = jnp.dot(m_p, w4_ref[...], preferred_element_type=jnp.float32)

    # ---- direct column stores of the pre-BN stage-B activations
    ab_ref[:, out1:out1 + out3] = y3
    ab_ref[:, out1 + out3:out1 + out3 + out5] = y5
    ab_ref[:, out1 + out3 + out5:] = yp

    # ---- single-traversal BN statistics, accumulated across the grid
    c1, c2 = out3, out3 + out5
    sb_ref[0:1, 0:c1] += jnp.sum(y3, axis=0, keepdims=True)
    sb_ref[1:2, 0:c1] += jnp.sum(y3 * y3, axis=0, keepdims=True)
    sb_ref[0:1, c1:c2] += jnp.sum(y5, axis=0, keepdims=True)
    sb_ref[1:2, c1:c2] += jnp.sum(y5 * y5, axis=0, keepdims=True)
    sb_ref[0:1, c2:] += jnp.sum(yp, axis=0, keepdims=True)
    sb_ref[1:2, c2:] += jnp.sum(yp * yp, axis=0, keepdims=True)


def _finalize_kernel(ab_ref, affb_ref, o_ref, *, out1):
    """Pass 3: fused scale/shift BN + ReLU on branches 2/3/4; branch1 columns
    pass straight through.  Writes the channel concat via two column stores."""
    ab = ab_ref[...]
    o_ref[:, 0:out1] = ab[:, 0:out1]
    o_ref[:, out1:] = jnp.maximum(
        ab[:, out1:] * affb_ref[0:1, :] + affb_ref[1:2, :], 0.0)


# ----------------------------------------------------------------- wrapper
def pack_params(params):
    """Pack per-branch conv/BN tensors for the three kernel passes.

    Conv biases are dropped: a bias feeding straight into training-mode
    BatchNorm cancels exactly against the batch mean."""
    w1, _, g1, e1 = params["b1"]
    w2a, _, g2a, e2a = params["b2a"]
    w2b, _, g2b, e2b = params["b2b"]
    w3a, _, g3a, e3a = params["b3a"]
    w3b, _, g3b, e3b = params["b3b"]
    w4, _, g4, e4 = params["b4"]

    w_a = jnp.concatenate([w1[0], w2a[0], w3a[0]], axis=1).astype(MXU_DTYPE)
    gb_a = jnp.stack([jnp.concatenate([g1, g2a, g3a]),
                      jnp.concatenate([e1, e2a, e3a])]).astype(jnp.float32)
    gb_b = jnp.stack([jnp.concatenate([g2b, g3b, g4]),
                      jnp.concatenate([e2b, e3b, e4])]).astype(jnp.float32)
    return dict(w_a=w_a, gb_a=gb_a,
                w3=w2b.astype(MXU_DTYPE),      # (3, red, out3) per-tap weights
                w5=w3b.astype(MXU_DTYPE),      # (5, red, out5)
                w4=w4[0].astype(MXU_DTYPE),    # (Cin, out_pool)
                gb_b=gb_b)


def _fold_bn(stats, gamma_beta, count):
    """Fold batch stats + (gamma, beta) into a scale/shift pair, f32."""
    mean = stats[0:1] / count
    var = stats[1:2] / count - mean * mean          # biased training variance
    scale = gamma_beta[0:1] * lax.rsqrt(var + EPS)
    shift = gamma_beta[1:2] - mean * scale
    return jnp.concatenate([scale, shift], axis=0)  # (2, C)


def _samples_per_tile(N, L, target_rows=1024):
    """Whole-sample row tiles: rows = spb*L, spb | N, rows % 8 == 0 (or spb==N).

    Prefer the largest tile <= target_rows; if the whole batch would fit in a
    single tile, still split in two (when legal) so the stats accumulation and
    the input/output pipeline are exercised."""
    legal = [s for s in range(1, N + 1)
             if N % s == 0 and ((s * L) % 8 == 0 or s == N)]
    under = [s for s in legal if s * L <= target_rows]
    spb = max(under) if under else min(legal)
    if spb == N and N > 1:
        smaller = [s for s in legal if s < N]
        if smaller:
            spb = max(smaller)
    return spb


def inception_forward(x_ncl, packed, dims):
    N, Cin, L = x_ncl.shape
    out1, red, out3, out5, outp = dims
    c_a = out1 + 2 * red
    c_b = out3 + out5 + outp
    c_out = out1 + c_b
    R = N * L

    spb = _samples_per_tile(N, L)
    TR = spb * L
    assert R % TR == 0
    n_tiles = R // TR

    # (N, C, L) -> (N, L, C) -> (R, C): n-major rows, channels on lanes, bf16.
    # NOTE(perf review): at production sizes this layout change (and the
    # inverse below) should be folded into the kernels to avoid two extra HBM
    # passes; kept in the wrapper here for clarity.
    x2d = jnp.transpose(x_ncl, (0, 2, 1)).reshape(R, Cin).astype(MXU_DTYPE)

    cparams_acc = pltpu.CompilerParams(          # stats accumulators -> serial
        dimension_semantics=("arbitrary",), vmem_limit_bytes=VMEM_LIMIT)
    cparams_par = pltpu.CompilerParams(          # finalize -> megacore-shardable
        dimension_semantics=("parallel",), vmem_limit_bytes=VMEM_LIMIT)

    row_spec = lambda w: pl.BlockSpec((TR, w), lambda i: (i, 0))
    full_spec = lambda *shape: pl.BlockSpec(shape, lambda i: (0,) * len(shape))

    # ---- pass 1: stage-A per-channel sum / sum-of-squares
    stats_a = pl.pallas_call(
        _stats_a_kernel,
        out_shape=jax.ShapeDtypeStruct((2, c_a), jnp.float32),
        grid=(n_tiles,),
        in_specs=[row_spec(Cin), full_spec(Cin, c_a)],
        out_specs=full_spec(2, c_a),
        compiler_params=cparams_acc,
    )(x2d, packed["w_a"])
    aff_a = _fold_bn(stats_a, packed["gb_a"], float(R))

    # ---- pass 2: branch1 output + pre-BN branch2/3/4 + stage-B stats
    kern2 = functools.partial(_stage_b_kernel, L=L, dims=dims)
    abuf, stats_b = pl.pallas_call(
        kern2,
        out_shape=(jax.ShapeDtypeStruct((R, c_out), jnp.float32),
                   jax.ShapeDtypeStruct((2, c_b), jnp.float32)),
        grid=(n_tiles,),
        in_specs=[row_spec(Cin),
                  full_spec(Cin, c_a), full_spec(2, c_a),
                  full_spec(3, red, out3), full_spec(5, red, out5),
                  full_spec(Cin, outp)],
        out_specs=(row_spec(c_out), full_spec(2, c_b)),
        compiler_params=cparams_acc,
    )(x2d, packed["w_a"], aff_a, packed["w3"], packed["w5"], packed["w4"])
    aff_b = _fold_bn(stats_b, packed["gb_b"], float(R))

    # ---- pass 3: fused BN+ReLU finalize; output reuses abuf's HBM buffer
    kern3 = functools.partial(_finalize_kernel, out1=out1)
    out2d = pl.pallas_call(
        kern3,
        out_shape=jax.ShapeDtypeStruct((R, c_out), jnp.float32),
        grid=(n_tiles,),
        in_specs=[row_spec(c_out), full_spec(2, c_b)],
        out_specs=row_spec(c_out),
        input_output_aliases={0: 0},
        compiler_params=cparams_par,
    )(abuf, aff_b)

    # (R, C_out) -> (N, L, C_out) -> (N, C_out, L)
    return jnp.transpose(out2d.reshape(N, L, c_out), (0, 2, 1))


# ------------------------------------------------------- pure-JAX reference
def _conv_bn_relu_ref(x_ncl, w_kio, b, gamma, beta):
    K = w_kio.shape[0]
    pad = (K - 1) // 2
    w_oik = jnp.transpose(w_kio, (2, 1, 0))
    y = lax.conv_general_dilated(x_ncl, w_oik, (1,), [(pad, pad)],
                                 dimension_numbers=('NCH', 'OIH', 'NCH'),
                                 precision=lax.Precision.HIGHEST)
    y = y + b[None, :, None]
    mean = jnp.mean(y, axis=(0, 2), keepdims=True)
    var = jnp.mean((y - mean) ** 2, axis=(0, 2), keepdims=True)
    yhat = (y - mean) * lax.rsqrt(var + EPS)
    return jnp.maximum(gamma[None, :, None] * yhat + beta[None, :, None], 0.0)


def inception_ref(x, p):
    b1 = _conv_bn_relu_ref(x, *p["b1"])
    b2 = _conv_bn_relu_ref(_conv_bn_relu_ref(x, *p["b2a"]), *p["b2b"])
    b3 = _conv_bn_relu_ref(_conv_bn_relu_ref(x, *p["b3a"]), *p["b3b"])
    pooled = lax.reduce_window(x, -jnp.inf, lax.max, (1, 3, 3), (1, 1, 1),
                               [(0, 0), (1, 1), (1, 1)])
    b4 = _conv_bn_relu_ref(pooled, *p["b4"])
    return jnp.concatenate([b1, b2, b3, b4], axis=1)


def make_conv_params(key, cin, cout, k):
    kw, kb, kg, ke = jax.random.split(key, 4)
    w = jax.random.normal(kw, (k, cin, cout), jnp.float32) / (cin * k) ** 0.5
    b = 0.1 * jax.random.normal(kb, (cout,), jnp.float32)
    gamma = 1.0 + 0.1 * jax.random.normal(kg, (cout,), jnp.float32)
    beta = 0.1 * jax.random.normal(ke, (cout,), jnp.float32)
    return w, b, gamma, beta


if __name__ == "__main__":
    key = jax.random.PRNGKey(0)
    kx, kp = jax.random.split(key)

    N, C_in, L = 2, 4, 16
    out_1x1, red_1x1, out_3x3, out_5x5, out_pool = 8, 4, 8, 8, 8
    dims = (out_1x1, red_1x1, out_3x3, out_5x5, out_pool)
    x = jax.random.normal(kx, (N, C_in, L), jnp.float32)

    conv_specs = [("b1", C_in, out_1x1, 1),
                  ("b2a", C_in, red_1x1, 1),
                  ("b2b", red_1x1, out_3x3, 3),
                  ("b3a", C_in, red_1x1, 1),
                  ("b3b", red_1x1, out_5x5, 5),
                  ("b4", C_in, out_pool, 1)]
    keys = jax.random.split(kp, len(conv_specs))
    params = {name: make_conv_params(kk, ci, co, k)
              for (name, ci, co, k), kk in zip(conv_specs, keys)}

    packed = pack_params(params)
    fwd = jax.jit(functools.partial(inception_forward, dims=dims))
    out = jax.block_until_ready(fwd(x, packed))

    ref = inception_ref(x, params)
    c_out = out_1x1 + out_3x3 + out_5x5 + out_pool
    assert out.shape == (N, c_out, L), out.shape
    err = float(jnp.max(jnp.abs(out - ref)))
    # bf16 MXU operands (per perf review) vs the f32 HIGHEST-precision
    # reference; with MXU_DTYPE = float32 this matches to ~1e-5.
    assert err < 1e-1, f"max abs err {err}"
    print("KERNEL_OK")
</pallas_src>

<mosaic_0001>
module attributes {stable_mosaic.version = 11 : i64} {
  func.func @_stats_a_kernel(%arg0: i32, %arg1: memref<16x4xbf16, #tpu.memory_space<vmem>>, %arg2: memref<4x16xbf16, #tpu.memory_space<vmem>>, %arg3: memref<2x16xf32, #tpu.memory_space<vmem>>) attributes {dimension_semantics = [#tpu.dimension_semantics<arbitrary>], iteration_bounds = array<i64: 2>, scalar_prefetch = 0 : i64, scratch_operands = 0 : i64, tpu.core_type = #tpu.core_type<tc>, window_params = [{transform_indices = @transform_0, window_bounds = array<i64: 16, 4>}, {pipeline_mode = #tpu.pipeline_mode<synchronous>, transform_indices = @transform_1, window_bounds = array<i64: 4, 16>}, {pipeline_mode = #tpu.pipeline_mode<synchronous>, transform_indices = @transform_2, window_bounds = array<i64: 2, 16>}]} {
    %c0_i32 = arith.constant 0 : i32
    %0 = arith.cmpi eq, %arg0, %c0_i32 : i32
    %1 = arith.extui %0 : i1 to i32
    %c0_i32_0 = arith.constant 0 : i32
    %2 = arith.cmpi ne, %1, %c0_i32_0 : i32
    scf.if %2 {
      %cst_13 = arith.constant 0.000000e+00 : f32
      %17 = vector.broadcast %cst_13 : f32 to vector<2x16xf32>
      %c0_14 = arith.constant 0 : index
      %c0_15 = arith.constant 0 : index
      %18 = vector.load %arg3[%c0_14, %c0_15] : memref<2x16xf32, #tpu.memory_space<vmem>>, vector<2x16xf32>
      tpu.vector_store %arg3[%c0_14, %c0_15], %17 {strides = array<i32>} : memref<2x16xf32, #tpu.memory_space<vmem>>, vector<2x16xf32>,
    } else {
    }
    %c0 = arith.constant 0 : index
    %c0_1 = arith.constant 0 : index
    %3 = vector.load %arg1[%c0, %c0_1] : memref<16x4xbf16, #tpu.memory_space<vmem>>, vector<16x4xbf16>
    %c0_2 = arith.constant 0 : index
    %c0_3 = arith.constant 0 : index
    %4 = vector.load %arg2[%c0_2, %c0_3] : memref<4x16xbf16, #tpu.memory_space<vmem>>, vector<4x16xbf16>
    %cst = arith.constant dense<0.000000e+00> : vector<16x16xf32>
    %5 = tpu.matmul %3, %4, %cst {dimension_numbers = #tpu.dot_dimension_numbers<[1], [0], [0], [1], [0, 0, 1, 1], [], []>} : vector<16x4xbf16>, vector<4x16xbf16>, vector<16x16xf32> -> vector<16x16xf32>
    %c0_4 = arith.constant 0 : index
    %c0_5 = arith.constant 0 : index
    %6 = vector.load %arg3[%c0_4, %c0_5] : memref<2x16xf32, #tpu.memory_space<vmem>>, vector<1x16xf32>
    %cst_6 = arith.constant dense<0.000000e+00> : vector<16xf32>
    %7 = vector.multi_reduction <add>, %5, %cst_6 [0] : vector<16x16xf32> to vector<16xf32>
    %8 = vector.shape_cast %7 : vector<16xf32> to vector<1x16xf32>
    %9 = arith.addf %6, %8 : vector<1x16xf32>
    %c0_7 = arith.constant 0 : index
    %c0_8 = arith.constant 0 : index
    %10 = vector.load %arg3[%c0_7, %c0_8] : memref<2x16xf32, #tpu.memory_space<vmem>>, vector<1x16xf32>
    tpu.vector_store %arg3[%c0_7, %c0_8], %9 {strides = array<i32>} : memref<2x16xf32, #tpu.memory_space<vmem>>, vector<1x16xf32>,
    %c1 = arith.constant 1 : index
    %c0_9 = arith.constant 0 : index
    %11 = vector.load %arg3[%c1, %c0_9] : memref<2x16xf32, #tpu.memory_space<vmem>>, vector<1x16xf32>
    %12 = arith.mulf %5, %5 : vector<16x16xf32>
    %cst_10 = arith.constant dense<0.000000e+00> : vector<16xf32>
    %13 = vector.multi_reduction <add>, %12, %cst_10 [0] : vector<16x16xf32> to vector<16xf32>
    %14 = vector.shape_cast %13 : vector<16xf32> to vector<1x16xf32>
    %15 = arith.addf %11, %14 : vector<1x16xf32>
    %c1_11 = arith.constant 1 : index
    %c0_12 = arith.constant 0 : index
    %16 = vector.load %arg3[%c1_11, %c0_12] : memref<2x16xf32, #tpu.memory_space<vmem>>, vector<1x16xf32>
    tpu.vector_store %arg3[%c1_11, %c0_12], %15 {strides = array<i32>} : memref<2x16xf32, #tpu.memory_space<vmem>>, vector<1x16xf32>,
    return
  }
  func.func @transform_0(%arg0: i32) -> (i32, i32) {
    %c0_i32 = arith.constant 0 : i32
    %c0_i32_0 = arith.constant 0 : i32
    return %arg0, %c0_i32 : i32, i32
  }
  func.func @transform_1(%arg0: i32) -> (i32, i32) {
    %c0_i32 = arith.constant 0 : i32
    %c0_i32_0 = arith.constant 0 : i32
    %c0_i32_1 = arith.constant 0 : i32
    return %c0_i32, %c0_i32_0 : i32, i32
  }
  func.func @transform_2(%arg0: i32) -> (i32, i32) {
    %c0_i32 = arith.constant 0 : i32
    %c0_i32_0 = arith.constant 0 : i32
    %c0_i32_1 = arith.constant 0 : i32
    return %c0_i32, %c0_i32_0 : i32, i32
  }
}

module attributes {stable_mosaic.version = 11 : i64} {
  func.func @_finalize_kernel(%arg0: i32, %arg1: memref<16x32xf32, #tpu.memory_space<vmem>>, %arg2: memref<2x24xf32, #tpu.memory_space<vmem>>, %arg3: memref<16x32xf32, #tpu.memory_space<vmem>>) attributes {dimension_semantics = [#tpu.dimension_semantics<parallel>], iteration_bounds = array<i64: 2>, scalar_prefetch = 0 : i64, scratch_operands = 0 : i64, tpu.core_type = #tpu.core_type<tc>, window_params = [{transform_indices = @transform_0, window_bounds = array<i64: 16, 32>}, {pipeline_mode = #tpu.pipeline_mode<synchronous>, transform_indices = @transform_1, window_bounds = array<i64: 2, 24>}, {transform_indices = @transform_2, window_bounds = array<i64: 16, 32>}]} {
    %c0 = arith.constant 0 : index
    %c0_0 = arith.constant 0 : index
    %0 = vector.load %arg1[%c0, %c0_0] : memref<16x32xf32, #tpu.memory_space<vmem>>, vector<16x32xf32>
    %1 = vector.extract_strided_slice %0 {offsets = [0, 0], sizes = [16, 8], strides = [1, 1]} : vector<16x32xf32> to vector<16x8xf32>
    %c0_1 = arith.constant 0 : index
    %c0_2 = arith.constant 0 : index
    %2 = vector.load %arg3[%c0_1, %c0_2] : memref<16x32xf32, #tpu.memory_space<vmem>>, vector<16x8xf32>
    tpu.vector_store %arg3[%c0_1, %c0_2], %1 {strides = array<i32>} : memref<16x32xf32, #tpu.memory_space<vmem>>, vector<16x8xf32>,
    %3 = vector.extract_strided_slice %0 {offsets = [0, 8], sizes = [16, 24], strides = [1, 1]} : vector<16x32xf32> to vector<16x24xf32>
    %c0_3 = arith.constant 0 : index
    %c0_4 = arith.constant 0 : index
    %4 = vector.load %arg2[%c0_3, %c0_4] : memref<2x24xf32, #tpu.memory_space<vmem>>, vector<1x24xf32>
    %5 = vector.broadcast %4 : vector<1x24xf32> to vector<16x24xf32>
    %6 = arith.mulf %3, %5 : vector<16x24xf32>
    %c1 = arith.constant 1 : index
    %c0_5 = arith.constant 0 : index
    %7 = vector.load %arg2[%c1, %c0_5] : memref<2x24xf32, #tpu.memory_space<vmem>>, vector<1x24xf32>
    %8 = vector.broadcast %7 : vector<1x24xf32> to vector<16x24xf32>
    %9 = arith.addf %6, %8 : vector<16x24xf32>
    %cst = arith.constant 0.000000e+00 : f32
    %10 = vector.broadcast %cst : f32 to vector<16x24xf32>
    %11 = arith.maximumf %9, %10 : vector<16x24xf32>
    %c0_6 = arith.constant 0 : index
    %c8 = arith.constant 8 : index
    %12 = vector.load %arg3[%c0_6, %c8] : memref<16x32xf32, #tpu.memory_space<vmem>>, vector<16x24xf32>
    tpu.vector_store %arg3[%c0_6, %c8], %11 {strides = array<i32>} : memref<16x32xf32, #tpu.memory_space<vmem>>, vector<16x24xf32>,
    return
  }
  func.func @transform_0(%arg0: i32) -> (i32, i32) {
    %c0_i32 = arith.constant 0 : i32
    %c0_i32_0 = arith.constant 0 : i32
    return %arg0, %c0_i32 : i32, i32
  }
  func.func @transform_1(%arg0: i32) -> (i32, i32) {
    %c0_i32 = arith.constant 0 : i32
    %c0_i32_0 = arith.constant 0 : i32
    %c0_i32_1 = arith.constant 0 : i32
    return %c0_i32, %c0_i32_0 : i32, i32
  }
  func.func @transform_2(%arg0: i32) -> (i32, i32) {
    %c0_i32 = arith.constant 0 : i32
    %c0_i32_0 = arith.constant 0 : i32
    return %arg0, %c0_i32 : i32, i32
  }
}

module attributes {stable_mosaic.version = 11 : i64} {
  func.func @_stage_b_kernel(%arg0: i32, %arg1: memref<16x4xbf16, #tpu.memory_space<vmem>>, %arg2: memref<4x16xbf16, #tpu.memory_space<vmem>>, %arg3: memref<2x16xf32, #tpu.memory_space<vmem>>, %arg4: memref<3x4x8xbf16, #tpu.memory_space<vmem>>, %arg5: memref<5x4x8xbf16, #tpu.memory_space<vmem>>, %arg6: memref<4x8xbf16, #tpu.memory_space<vmem>>, %arg7: memref<16x32xf32, #tpu.memory_space<vmem>>, %arg8: memref<2x24xf32, #tpu.memory_space<vmem>>) attributes {dimension_semantics = [#tpu.dimension_semantics<arbitrary>], iteration_bounds = array<i64: 2>, scalar_prefetch = 0 : i64, scratch_operands = 0 : i64, tpu.core_type = #tpu.core_type<tc>, window_params = [{transform_indices = @transform_0, window_bounds = array<i64: 16, 4>}, {pipeline_mode = #tpu.pipeline_mode<synchronous>, transform_indices = @transform_1, window_bounds = array<i64: 4, 16>}, {pipeline_mode = #tpu.pipeline_mode<synchronous>, transform_indices = @transform_2, window_bounds = array<i64: 2, 16>}, {pipeline_mode = #tpu.pipeline_mode<synchronous>, transform_indices = @transform_3, window_bounds = array<i64: 3, 4, 8>}, {pipeline_mode = #tpu.pipeline_mode<synchronous>, transform_indices = @transform_4, window_bounds = array<i64: 5, 4, 8>}, {pipeline_mode = #tpu.pipeline_mode<synchronous>, transform_indices = @transform_5, window_bounds = array<i64: 4, 8>}, {transform_indices = @transform_6, window_bounds = array<i64: 16, 32>}, {pipeline_mode = #tpu.pipeline_mode<synchronous>, transform_indices = @transform_7, window_bounds = array<i64: 2, 24>}]} {
    %c0_i32 = arith.constant 0 : i32
    %0 = arith.cmpi eq, %arg0, %c0_i32 : i32
    %1 = arith.extui %0 : i1 to i32
    %c0_i32_0 = arith.constant 0 : i32
    %2 = arith.cmpi ne, %1, %c0_i32_0 : i32
    scf.if %2 {
      %cst_95 = arith.constant 0.000000e+00 : f32
      %200 = vector.broadcast %cst_95 : f32 to vector<2x24xf32>
      %c0_96 = arith.constant 0 : index
      %c0_97 = arith.constant 0 : index
      %201 = vector.load %arg8[%c0_96, %c0_97] : memref<2x24xf32, #tpu.memory_space<vmem>>, vector<2x24xf32>
      tpu.vector_store %arg8[%c0_96, %c0_97], %200 {strides = array<i32>} : memref<2x24xf32, #tpu.memory_space<vmem>>, vector<2x24xf32>,
    } else {
    }
    %c0 = arith.constant 0 : index
    %c0_1 = arith.constant 0 : index
    %3 = vector.load %arg1[%c0, %c0_1] : memref<16x4xbf16, #tpu.memory_space<vmem>>, vector<16x4xbf16>
    %4 = tpu.iota {dimensions = array<i32: 0>} : vector<16x1xi32>
    %c16_i32 = arith.constant 16 : i32
    %c0_i32_2 = arith.constant 0 : i32
    %5 = arith.cmpi eq, %c16_i32, %c0_i32_2 : i32
    %c1_i32 = arith.constant 1 : i32
    %6 = arith.select %5, %c1_i32, %c16_i32 : i32
    %7 = vector.broadcast %6 : i32 to vector<16x1xi32>
    %8 = arith.remsi %4, %7 : vector<16x1xi32>
    %c0_i32_3 = arith.constant 0 : i32
    %9 = vector.broadcast %c0_i32_3 : i32 to vector<16x1xi32>
    %10 = arith.cmpi ne, %8, %9 : vector<16x1xi32>
    %c0_i32_4 = arith.constant 0 : i32
    %11 = vector.broadcast %c0_i32_4 : i32 to vector<16x1xi32>
    %12 = arith.cmpi slt, %8, %11 : vector<16x1xi32>
    %c0_i32_5 = arith.constant 0 : i32
    %13 = arith.cmpi slt, %6, %c0_i32_5 : i32
    %14 = vector.broadcast %13 : i1 to vector<16x1xi1>
    %15 = vector.broadcast %14 : vector<16x1xi1> to vector<16x1xi1>
    %16 = arith.xori %12, %15 : vector<16x1xi1>
    %17 = arith.andi %16, %10 : vector<16x1xi1>
    %18 = vector.broadcast %6 : i32 to vector<16x1xi32>
    %19 = arith.addi %8, %18 : vector<16x1xi32>
    %20 = arith.select %17, %19, %8 : vector<16x1xi1>, vector<16x1xi32>
    %c0_6 = arith.constant 0 : index
    %c0_7 = arith.constant 0 : index
    %21 = vector.load %arg2[%c0_6, %c0_7] : memref<4x16xbf16, #tpu.memory_space<vmem>>, vector<4x16xbf16>
    %cst = arith.constant dense<0.000000e+00> : vector<16x16xf32>
    %22 = tpu.matmul %3, %21, %cst {dimension_numbers = #tpu.dot_dimension_numbers<[1], [0], [0], [1], [0, 0, 1, 1], [], []>} : vector<16x4xbf16>, vector<4x16xbf16>, vector<16x16xf32> -> vector<16x16xf32>
    %c0_8 = arith.constant 0 : index
    %c0_9 = arith.constant 0 : index
    %23 = vector.load %arg3[%c0_8, %c0_9] : memref<2x16xf32, #tpu.memory_space<vmem>>, vector<1x16xf32>
    %24 = vector.broadcast %23 : vector<1x16xf32> to vector<16x16xf32>
    %25 = arith.mulf %22, %24 : vector<16x16xf32>
    %c1 = arith.constant 1 : index
    %c0_10 = arith.constant 0 : index
    %26 = vector.load %arg3[%c1, %c0_10] : memref<2x16xf32, #tpu.memory_space<vmem>>, vector<1x16xf32>
    %27 = vector.broadcast %26 : vector<1x16xf32> to vector<16x16xf32>
    %28 = arith.addf %25, %27 : vector<16x16xf32>
    %cst_11 = arith.constant 0.000000e+00 : f32
    %29 = vector.broadcast %cst_11 : f32 to vector<16x16xf32>
    %30 = arith.maximumf %28, %29 : vector<16x16xf32>
    %31 = vector.extract_strided_slice %30 {offsets = [0, 0], sizes = [16, 8], strides = [1, 1]} : vector<16x16xf32> to vector<16x8xf32>
    %c0_12 = arith.constant 0 : index
    %c0_13 = arith.constant 0 : index
    %32 = vector.load %arg7[%c0_12, %c0_13] : memref<16x32xf32, #tpu.memory_space<vmem>>, vector<16x8xf32>
    tpu.vector_store %arg7[%c0_12, %c0_13], %31 {strides = array<i32>} : memref<16x32xf32, #tpu.memory_space<vmem>>, vector<16x8xf32>,
    %33 = vector.extract_strided_slice %30 {offsets = [0, 8], sizes = [16, 4], strides = [1, 1]} : vector<16x16xf32> to vector<16x4xf32>
    %34 = arith.truncf %33 : vector<16x4xf32> to vector<16x4xbf16>
    %35 = vector.extract_strided_slice %30 {offsets = [0, 12], sizes = [16, 4], strides = [1, 1]} : vector<16x16xf32> to vector<16x4xf32>
    %36 = arith.truncf %35 : vector<16x4xf32> to vector<16x4xbf16>
    %c1_14 = arith.constant 1 : index
    %c0_15 = arith.constant 0 : index
    %c0_16 = arith.constant 0 : index
    %37 = vector.load %arg4[%c1_14, %c0_15, %c0_16] : memref<3x4x8xbf16, #tpu.memory_space<vmem>>, vector<1x4x8xbf16>
    %38 = vector.shape_cast %37 : vector<1x4x8xbf16> to vector<4x8xbf16>
    %cst_17 = arith.constant dense<0.000000e+00> : vector<16x8xf32>
    %39 = tpu.matmul %34, %38, %cst_17 {dimension_numbers = #tpu.dot_dimension_numbers<[1], [0], [0], [1], [0, 0, 1, 1], [], []>} : vector<16x4xbf16>, vector<4x8xbf16>, vector<16x8xf32> -> vector<16x8xf32>
    %40 = vector.extract_strided_slice %34 {offsets = [15, 0], sizes = [1, 4], strides = [1, 1]} : vector<16x4xbf16> to vector<1x4xbf16>
    %41 = vector.extract_strided_slice %34 {offsets = [0, 0], sizes = [15, 4], strides = [1, 1]} : vector<16x4xbf16> to vector<15x4xbf16>
    %42 = tpu.concatenate %40, %41 in 0 : vector<1x4xbf16>, vector<15x4xbf16> -> vector<16x4xbf16>
    %c1_i32_18 = arith.constant 1 : i32
    %43 = vector.broadcast %c1_i32_18 : i32 to vector<16x1xi32>
    %44 = arith.cmpi sge, %20, %43 : vector<16x1xi32>
    %cst_19 = arith.constant 0.000000e+00 : bf16
    %45 = vector.shape_cast %44 : vector<16x1xi1> to vector<16x1xi1>
    %46 = vector.broadcast %45 : vector<16x1xi1> to vector<16x4xi1>
    %47 = vector.broadcast %cst_19 : bf16 to vector<16x4xbf16>
    %48 = arith.select %46, %42, %47 : vector<16x4xi1>, vector<16x4xbf16>
    %c0_20 = arith.constant 0 : index
    %c0_21 = arith.constant 0 : index
    %c0_22 = arith.constant 0 : index
    %49 = vector.load %arg4[%c0_20, %c0_21, %c0_22] : memref<3x4x8xbf16, #tpu.memory_space<vmem>>, vector<1x4x8xbf16>
    %50 = vector.shape_cast %49 : vector<1x4x8xbf16> to vector<4x8xbf16>
    %cst_23 = arith.constant dense<0.000000e+00> : vector<16x8xf32>
    %51 = tpu.matmul %48, %50, %cst_23 {dimension_numbers = #tpu.dot_dimension_numbers<[1], [0], [0], [1], [0, 0, 1, 1], [], []>} : vector<16x4xbf16>, vector<4x8xbf16>, vector<16x8xf32> -> vector<16x8xf32>
    %52 = arith.addf %39, %51 : vector<16x8xf32>
    %53 = vector.extract_strided_slice %34 {offsets = [1, 0], sizes = [15, 4], strides = [1, 1]} : vector<16x4xbf16> to vector<15x4xbf16>
    %54 = vector.extract_strided_slice %34 {offsets = [0, 0], sizes = [1, 4], strides = [1, 1]} : vector<16x4xbf16> to vector<1x4xbf16>
    %55 = tpu.concatenate %53, %54 in 0 : vector<15x4xbf16>, vector<1x4xbf16> -> vector<16x4xbf16>
    %c15_i32 = arith.constant 15 : i32
    %56 = vector.broadcast %c15_i32 : i32 to vector<16x1xi32>
    %57 = arith.cmpi slt, %20, %56 : vector<16x1xi32>
    %cst_24 = arith.constant 0.000000e+00 : bf16
    %58 = vector.shape_cast %57 : vector<16x1xi1> to vector<16x1xi1>
    %59 = vector.broadcast %58 : vector<16x1xi1> to vector<16x4xi1>
    %60 = vector.broadcast %cst_24 : bf16 to vector<16x4xbf16>
    %61 = arith.select %59, %55, %60 : vector<16x4xi1>, vector<16x4xbf16>
    %c2 = arith.constant 2 : index
    %c0_25 = arith.constant 0 : index
    %c0_26 = arith.constant 0 : index
    %62 = vector.load %arg4[%c2, %c0_25, %c0_26] : memref<3x4x8xbf16, #tpu.memory_space<vmem>>, vector<1x4x8xbf16>
    %63 = vector.shape_cast %62 : vector<1x4x8xbf16> to vector<4x8xbf16>
    %cst_27 = arith.constant dense<0.000000e+00> : vector<16x8xf32>
    %64 = tpu.matmul %61, %63, %cst_27 {dimension_numbers = #tpu.dot_dimension_numbers<[1], [0], [0], [1], [0, 0, 1, 1], [], []>} : vector<16x4xbf16>, vector<4x8xbf16>, vector<16x8xf32> -> vector<16x8xf32>
    %65 = arith.addf %52, %64 : vector<16x8xf32>
    %c2_28 = arith.constant 2 : index
    %c0_29 = arith.constant 0 : index
    %c0_30 = arith.constant 0 : index
    %66 = vector.load %arg5[%c2_28, %c0_29, %c0_30] : memref<5x4x8xbf16, #tpu.memory_space<vmem>>, vector<1x4x8xbf16>
    %67 = vector.shape_cast %66 : vector<1x4x8xbf16> to vector<4x8xbf16>
    %cst_31 = arith.constant dense<0.000000e+00> : vector<16x8xf32>
    %68 = tpu.matmul %36, %67, %cst_31 {dimension_numbers = #tpu.dot_dimension_numbers<[1], [0], [0], [1], [0, 0, 1, 1], [], []>} : vector<16x4xbf16>, vector<4x8xbf16>, vector<16x8xf32> -> vector<16x8xf32>
    %69 = vector.extract_strided_slice %36 {offsets = [14, 0], sizes = [2, 4], strides = [1, 1]} : vector<16x4xbf16> to vector<2x4xbf16>
    %70 = vector.extract_strided_slice %36 {offsets = [0, 0], sizes = [14, 4], strides = [1, 1]} : vector<16x4xbf16> to vector<14x4xbf16>
    %71 = tpu.concatenate %69, %70 in 0 : vector<2x4xbf16>, vector<14x4xbf16> -> vector<16x4xbf16>
    %c2_i32 = arith.constant 2 : i32
    %72 = vector.broadcast %c2_i32 : i32 to vector<16x1xi32>
    %73 = arith.cmpi sge, %20, %72 : vector<16x1xi32>
    %cst_32 = arith.constant 0.000000e+00 : bf16
    %74 = vector.shape_cast %73 : vector<16x1xi1> to vector<16x1xi1>
    %75 = vector.broadcast %74 : vector<16x1xi1> to vector<16x4xi1>
    %76 = vector.broadcast %cst_32 : bf16 to vector<16x4xbf16>
    %77 = arith.select %75, %71, %76 : vector<16x4xi1>, vector<16x4xbf16>
    %c0_33 = arith.constant 0 : index
    %c0_34 = arith.constant 0 : index
    %c0_35 = arith.constant 0 : index
    %78 = vector.load %arg5[%c0_33, %c0_34, %c0_35] : memref<5x4x8xbf16, #tpu.memory_space<vmem>>, vector<1x4x8xbf16>
    %79 = vector.shape_cast %78 : vector<1x4x8xbf16> to vector<4x8xbf16>
    %cst_36 = arith.constant dense<0.000000e+00> : vector<16x8xf32>
    %80 = tpu.matmul %77, %79, %cst_36 {dimension_numbers = #tpu.dot_dimension_numbers<[1], [0], [0], [1], [0, 0, 1, 1], [], []>} : vector<16x4xbf16>, vector<4x8xbf16>, vector<16x8xf32> -> vector<16x8xf32>
    %81 = arith.addf %68, %80 : vector<16x8xf32>
    %82 = vector.extract_strided_slice %36 {offsets = [15, 0], sizes = [1, 4], strides = [1, 1]} : vector<16x4xbf16> to vector<1x4xbf16>
    %83 = vector.extract_strided_slice %36 {offsets = [0, 0], sizes = [15, 4], strides = [1, 1]} : vector<16x4xbf16> to vector<15x4xbf16>
    %84 = tpu.concatenate %82, %83 in 0 : vector<1x4xbf16>, vector<15x4xbf16> -> vector<16x4xbf16>
    %c1_i32_37 = arith.constant 1 : i32
    %85 = vector.broadcast %c1_i32_37 : i32 to vector<16x1xi32>
    %86 = arith.cmpi sge, %20, %85 : vector<16x1xi32>
    %cst_38 = arith.constant 0.000000e+00 : bf16
    %87 = vector.shape_cast %86 : vector<16x1xi1> to vector<16x1xi1>
    %88 = vector.broadcast %87 : vector<16x1xi1> to vector<16x4xi1>
    %89 = vector.broadcast %cst_38 : bf16 to vector<16x4xbf16>
    %90 = arith.select %88, %84, %89 : vector<16x4xi1>, vector<16x4xbf16>
    %c1_39 = arith.constant 1 : index
    %c0_40 = arith.constant 0 : index
    %c0_41 = arith.constant 0 : index
    %91 = vector.load %arg5[%c1_39, %c0_40, %c0_41] : memref<5x4x8xbf16, #tpu.memory_space<vmem>>, vector<1x4x8xbf16>
    %92 = vector.shape_cast %91 : vector<1x4x8xbf16> to vector<4x8xbf16>
    %cst_42 = arith.constant dense<0.000000e+00> : vector<16x8xf32>
    %93 = tpu.matmul %90, %92, %cst_42 {dimension_numbers = #tpu.dot_dimension_numbers<[1], [0], [0], [1], [0, 0, 1, 1], [], []>} : vector<16x4xbf16>, vector<4x8xbf16>, vector<16x8xf32> -> vector<16x8xf32>
    %94 = arith.addf %81, %93 : vector<16x8xf32>
    %95 = vector.extract_strided_slice %36 {offsets = [1, 0], sizes = [15, 4], strides = [1, 1]} : vector<16x4xbf16> to vector<15x4xbf16>
    %96 = vector.extract_strided_slice %36 {offsets = [0, 0], sizes = [1, 4], strides = [1, 1]} : vector<16x4xbf16> to vector<1x4xbf16>
    %97 = tpu.concatenate %95, %96 in 0 : vector<15x4xbf16>, vector<1x4xbf16> -> vector<16x4xbf16>
    %c15_i32_43 = arith.constant 15 : i32
    %98 = vector.broadcast %c15_i32_43 : i32 to vector<16x1xi32>
    %99 = arith.cmpi slt, %20, %98 : vector<16x1xi32>
    %cst_44 = arith.constant 0.000000e+00 : bf16
    %100 = vector.shape_cast %99 : vector<16x1xi1> to vector<16x1xi1>
    %101 = vector.broadcast %100 : vector<16x1xi1> to vector<16x4xi1>
    %102 = vector.broadcast %cst_44 : bf16 to vector<16x4xbf16>
    %103 = arith.select %101, %97, %102 : vector<16x4xi1>, vector<16x4xbf16>
    %c3 = arith.constant 3 : index
    %c0_45 = arith.constant 0 : index
    %c0_46 = arith.constant 0 : index
    %104 = vector.load %arg5[%c3, %c0_45, %c0_46] : memref<5x4x8xbf16, #tpu.memory_space<vmem>>, vector<1x4x8xbf16>
    %105 = vector.shape_cast %104 : vector<1x4x8xbf16> to vector<4x8xbf16>
    %cst_47 = arith.constant dense<0.000000e+00> : vector<16x8xf32>
    %106 = tpu.matmul %103, %105, %cst_47 {dimension_numbers = #tpu.dot_dimension_numbers<[1], [0], [0], [1], [0, 0, 1, 1], [], []>} : vector<16x4xbf16>, vector<4x8xbf16>, vector<16x8xf32> -> vector<16x8xf32>
    %107 = arith.addf %94, %106 : vector<16x8xf32>
    %108 = vector.extract_strided_slice %36 {offsets = [2, 0], sizes = [14, 4], strides = [1, 1]} : vector<16x4xbf16> to vector<14x4xbf16>
    %109 = vector.extract_strided_slice %36 {offsets = [0, 0], sizes = [2, 4], strides = [1, 1]} : vector<16x4xbf16> to vector<2x4xbf16>
    %110 = tpu.concatenate %108, %109 in 0 : vector<14x4xbf16>, vector<2x4xbf16> -> vector<16x4xbf16>
    %c14_i32 = arith.constant 14 : i32
    %111 = vector.broadcast %c14_i32 : i32 to vector<16x1xi32>
    %112 = arith.cmpi slt, %20, %111 : vector<16x1xi32>
    %cst_48 = arith.constant 0.000000e+00 : bf16
    %113 = vector.shape_cast %112 : vector<16x1xi1> to vector<16x1xi1>
    %114 = vector.broadcast %113 : vector<16x1xi1> to vector<16x4xi1>
    %115 = vector.broadcast %cst_48 : bf16 to vector<16x4xbf16>
    %116 = arith.select %114, %110, %115 : vector<16x4xi1>, vector<16x4xbf16>
    %c4 = arith.constant 4 : index
    %c0_49 = arith.constant 0 : index
    %c0_50 = arith.constant 0 : index
    %117 = vector.load %arg5[%c4, %c0_49, %c0_50] : memref<5x4x8xbf16, #tpu.memory_space<vmem>>, vector<1x4x8xbf16>
    %118 = vector.shape_cast %117 : vector<1x4x8xbf16> to vector<4x8xbf16>
    %cst_51 = arith.constant dense<0.000000e+00> : vector<16x8xf32>
    %119 = tpu.matmul %116, %118, %cst_51 {dimension_numbers = #tpu.dot_dimension_numbers<[1], [0], [0], [1], [0, 0, 1, 1], [], []>} : vector<16x4xbf16>, vector<4x8xbf16>, vector<16x8xf32> -> vector<16x8xf32>
    %120 = arith.addf %107, %119 : vector<16x8xf32>
    %121 = tpu.iota {dimensions = array<i32: 1>} : vector<1x4xi32>
    %c1_i32_52 = arith.constant 1 : i32
    %122 = vector.broadcast %c1_i32_52 : i32 to vector<1x4xi32>
    %123 = arith.cmpi sge, %121, %122 : vector<1x4xi32>
    %124 = vector.extract_strided_slice %3 {offsets = [0, 3], sizes = [16, 1], strides = [1, 1]} : vector<16x4xbf16> to vector<16x1xbf16>
    %125 = vector.extract_strided_slice %3 {offsets = [0, 0], sizes = [16, 3], strides = [1, 1]} : vector<16x4xbf16> to vector<16x3xbf16>
    %126 = tpu.concatenate %124, %125 in 1 : vector<16x1xbf16>, vector<16x3xbf16> -> vector<16x4xbf16>
    %cst_53 = arith.constant -1.000260e+30 : bf16
    %127 = vector.shape_cast %123 : vector<1x4xi1> to vector<1x4xi1>
    %128 = vector.broadcast %127 : vector<1x4xi1> to vector<16x4xi1>
    %129 = vector.broadcast %cst_53 : bf16 to vector<16x4xbf16>
    %130 = arith.select %128, %126, %129 : vector<16x4xi1>, vector<16x4xbf16>
    %131 = arith.maximumf %3, %130 : vector<16x4xbf16>
    %c3_i32 = arith.constant 3 : i32
    %132 = vector.broadcast %c3_i32 : i32 to vector<1x4xi32>
    %133 = arith.cmpi slt, %121, %132 : vector<1x4xi32>
    %134 = vector.extract_strided_slice %3 {offsets = [0, 1], sizes = [16, 3], strides = [1, 1]} : vector<16x4xbf16> to vector<16x3xbf16>
    %135 = vector.extract_strided_slice %3 {offsets = [0, 0], sizes = [16, 1], strides = [1, 1]} : vector<16x4xbf16> to vector<16x1xbf16>
    %136 = tpu.concatenate %134, %135 in 1 : vector<16x3xbf16>, vector<16x1xbf16> -> vector<16x4xbf16>
    %cst_54 = arith.constant -1.000260e+30 : bf16
    %137 = vector.shape_cast %133 : vector<1x4xi1> to vector<1x4xi1>
    %138 = vector.broadcast %137 : vector<1x4xi1> to vector<16x4xi1>
    %139 = vector.broadcast %cst_54 : bf16 to vector<16x4xbf16>
    %140 = arith.select %138, %136, %139 : vector<16x4xi1>, vector<16x4xbf16>
    %141 = arith.maximumf %131, %140 : vector<16x4xbf16>
    %142 = vector.extract_strided_slice %141 {offsets = [15, 0], sizes = [1, 4], strides = [1, 1]} : vector<16x4xbf16> to vector<1x4xbf16>
    %143 = vector.extract_strided_slice %141 {offsets = [0, 0], sizes = [15, 4], strides = [1, 1]} : vector<16x4xbf16> to vector<15x4xbf16>
    %144 = tpu.concatenate %142, %143 in 0 : vector<1x4xbf16>, vector<15x4xbf16> -> vector<16x4xbf16>
    %c1_i32_55 = arith.constant 1 : i32
    %145 = vector.broadcast %c1_i32_55 : i32 to vector<16x1xi32>
    %146 = arith.cmpi sge, %20, %145 : vector<16x1xi32>
    %cst_56 = arith.constant -1.000260e+30 : bf16
    %147 = vector.shape_cast %146 : vector<16x1xi1> to vector<16x1xi1>
    %148 = vector.broadcast %147 : vector<16x1xi1> to vector<16x4xi1>
    %149 = vector.broadcast %cst_56 : bf16 to vector<16x4xbf16>
    %150 = arith.select %148, %144, %149 : vector<16x4xi1>, vector<16x4xbf16>
    %151 = arith.maximumf %141, %150 : vector<16x4xbf16>
    %152 = vector.extract_strided_slice %141 {offsets = [1, 0], sizes = [15, 4], strides = [1, 1]} : vector<16x4xbf16> to vector<15x4xbf16>
    %153 = vector.extract_strided_slice %141 {offsets = [0, 0], sizes = [1, 4], strides = [1, 1]} : vector<16x4xbf16> to vector<1x4xbf16>
    %154 = tpu.concatenate %152, %153 in 0 : vector<15x4xbf16>, vector<1x4xbf16> -> vector<16x4xbf16>
    %c15_i32_57 = arith.constant 15 : i32
    %155 = vector.broadcast %c15_i32_57 : i32 to vector<16x1xi32>
    %156 = arith.cmpi slt, %20, %155 : vector<16x1xi32>
    %cst_58 = arith.constant -1.000260e+30 : bf16
    %157 = vector.shape_cast %156 : vector<16x1xi1> to vector<16x1xi1>
    %158 = vector.broadcast %157 : vector<16x1xi1> to vector<16x4xi1>
    %159 = vector.broadcast %cst_58 : bf16 to vector<16x4xbf16>
    %160 = arith.select %158, %154, %159 : vector<16x4xi1>, vector<16x4xbf16>
    %161 = arith.maximumf %151, %160 : vector<16x4xbf16>
    %c0_59 = arith.constant 0 : index
    %c0_60 = arith.constant 0 : index
    %162 = vector.load %arg6[%c0_59, %c0_60] : memref<4x8xbf16, #tpu.memory_space<vmem>>, vector<4x8xbf16>
    %cst_61 = arith.constant dense<0.000000e+00> : vector<16x8xf32>
    %163 = tpu.matmul %161, %162, %cst_61 {dimension_numbers = #tpu.dot_dimension_numbers<[1], [0], [0], [1], [0, 0, 1, 1], [], []>} : vector<16x4xbf16>, vector<4x8xbf16>, vector<16x8xf32> -> vector<16x8xf32>
    %c0_62 = arith.constant 0 : index
    %c8 = arith.constant 8 : index
    %164 = vector.load %arg7[%c0_62, %c8] : memref<16x32xf32, #tpu.memory_space<vmem>>, vector<16x8xf32>
    tpu.vector_store %arg7[%c0_62, %c8], %65 {strides = array<i32>} : memref<16x32xf32, #tpu.memory_space<vmem>>, vector<16x8xf32>,
    %c0_63 = arith.constant 0 : index
    %c16 = arith.constant 16 : index
    %165 = vector.load %arg7[%c0_63, %c16] : memref<16x32xf32, #tpu.memory_space<vmem>>, vector<16x8xf32>
    tpu.vector_store %arg7[%c0_63, %c16], %120 {strides = array<i32>} : memref<16x32xf32, #tpu.memory_space<vmem>>, vector<16x8xf32>,
    %c0_64 = arith.constant 0 : index
    %c24 = arith.constant 24 : index
    %166 = vector.load %arg7[%c0_64, %c24] : memref<16x32xf32, #tpu.memory_space<vmem>>, vector<16x8xf32>
    tpu.vector_store %arg7[%c0_64, %c24], %163 {strides = array<i32>} : memref<16x32xf32, #tpu.memory_space<vmem>>, vector<16x8xf32>,
    %c0_65 = arith.constant 0 : index
    %c0_66 = arith.constant 0 : index
    %167 = vector.load %arg8[%c0_65, %c0_66] : memref<2x24xf32, #tpu.memory_space<vmem>>, vector<1x8xf32>
    %cst_67 = arith.constant dense<0.000000e+00> : vector<8xf32>
    %168 = vector.multi_reduction <add>, %65, %cst_67 [0] : vector<16x8xf32> to vector<8xf32>
    %169 = vector.shape_cast %168 : vector<8xf32> to vector<1x8xf32>
    %170 = arith.addf %167, %169 : vector<1x8xf32>
    %c0_68 = arith.constant 0 : index
    %c0_69 = arith.constant 0 : index
    %171 = vector.load %arg8[%c0_68, %c0_69] : memref<2x24xf32, #tpu.memory_space<vmem>>, vector<1x8xf32>
    tpu.vector_store %arg8[%c0_68, %c0_69], %170 {strides = array<i32>} : memref<2x24xf32, #tpu.memory_space<vmem>>, vector<1x8xf32>,
    %c1_70 = arith.constant 1 : index
    %c0_71 = arith.constant 0 : index
    %172 = vector.load %arg8[%c1_70, %c0_71] : memref<2x24xf32, #tpu.memory_space<vmem>>, vector<1x8xf32>
    %173 = arith.mulf %65, %65 : vector<16x8xf32>
    %cst_72 = arith.constant dense<0.000000e+00> : vector<8xf32>
    %174 = vector.multi_reduction <add>, %173, %cst_72 [0] : vector<16x8xf32> to vector<8xf32>
    %175 = vector.shape_cast %174 : vector<8xf32> to vector<1x8xf32>
    %176 = arith.addf %172, %175 : vector<1x8xf32>
    %c1_73 = arith.constant 1 : index
    %c0_74 = arith.constant 0 : index
    %177 = vector.load %arg8[%c1_73, %c0_74] : memref<2x24xf32, #tpu.memory_space<vmem>>, vector<1x8xf32>
    tpu.vector_store %arg8[%c1_73, %c0_74], %176 {strides = array<i32>} : memref<2x24xf32, #tpu.memory_space<vmem>>, vector<1x8xf32>,
    %c0_75 = arith.constant 0 : index
    %c8_76 = arith.constant 8 : index
    %178 = vector.load %arg8[%c0_75, %c8_76] : memref<2x24xf32, #tpu.memory_space<vmem>>, vector<1x8xf32>
    %cst_77 = arith.constant dense<0.000000e+00> : vector<8xf32>
    %179 = vector.multi_reduction <add>, %120, %cst_77 [0] : vector<16x8xf32> to vector<8xf32>
    %180 = vector.shape_cast %179 : vector<8xf32> to vector<1x8xf32>
    %181 = arith.addf %178, %180 : vector<1x8xf32>
    %c0_78 = arith.constant 0 : index
    %c8_79 = arith.constant 8 : index
    %182 = vector.load %arg8[%c0_78, %c8_79] : memref<2x24xf32, #tpu.memory_space<vmem>>, vector<1x8xf32>
    tpu.vector_store %arg8[%c0_78, %c8_79], %181 {strides = array<i32>} : memref<2x24xf32, #tpu.memory_space<vmem>>, vector<1x8xf32>,
    %c1_80 = arith.constant 1 : index
    %c8_81 = arith.constant 8 : index
    %183 = vector.load %arg8[%c1_80, %c8_81] : memref<2x24xf32, #tpu.memory_space<vmem>>, vector<1x8xf32>
    %184 = arith.mulf %120, %120 : vector<16x8xf32>
    %cst_82 = arith.constant dense<0.000000e+00> : vector<8xf32>
    %185 = vector.multi_reduction <add>, %184, %cst_82 [0] : vector<16x8xf32> to vector<8xf32>
    %186 = vector.shape_cast %185 : vector<8xf32> to vector<1x8xf32>
    %187 = arith.addf %183, %186 : vector<1x8xf32>
    %c1_83 = arith.constant 1 : index
    %c8_84 = arith.constant 8 : index
    %188 = vector.load %arg8[%c1_83, %c8_84] : memref<2x24xf32, #tpu.memory_space<vmem>>, vector<1x8xf32>
    tpu.vector_store %arg8[%c1_83, %c8_84], %187 {strides = array<i32>} : memref<2x24xf32, #tpu.memory_space<vmem>>, vector<1x8xf32>,
    %c0_85 = arith.constant 0 : index
    %c16_86 = arith.constant 16 : index
    %189 = vector.load %arg8[%c0_85, %c16_86] : memref<2x24xf32, #tpu.memory_space<vmem>>, vector<1x8xf32>
    %cst_87 = arith.constant dense<0.000000e+00> : vector<8xf32>
    %190 = vector.multi_reduction <add>, %163, %cst_87 [0] : vector<16x8xf32> to vector<8xf32>
    %191 = vector.shape_cast %190 : vector<8xf32> to vector<1x8xf32>
    %192 = arith.addf %189, %191 : vector<1x8xf32>
    %c0_88 = arith.constant 0 : index
    %c16_89 = arith.constant 16 : index
    %193 = vector.load %arg8[%c0_88, %c16_89] : memref<2x24xf32, #tpu.memory_space<vmem>>, vector<1x8xf32>
    tpu.vector_store %arg8[%c0_88, %c16_89], %192 {strides = array<i32>} : memref<2x24xf32, #tpu.memory_space<vmem>>, vector<1x8xf32>,
    %c1_90 = arith.constant 1 : index
    %c16_91 = arith.constant 16 : index
    %194 = vector.load %arg8[%c1_90, %c16_91] : memref<2x24xf32, #tpu.memory_space<vmem>>, vector<1x8xf32>
    %195 = arith.mulf %163, %163 : vector<16x8xf32>
    %cst_92 = arith.constant dense<0.000000e+00> : vector<8xf32>
    %196 = vector.multi_reduction <add>, %195, %cst_92 [0] : vector<16x8xf32> to vector<8xf32>
    %197 = vector.shape_cast %196 : vector<8xf32> to vector<1x8xf32>
    %198 = arith.addf %194, %197 : vector<1x8xf32>
    %c1_93 = arith.constant 1 : index
    %c16_94 = arith.constant 16 : index
    %199 = vector.load %arg8[%c1_93, %c16_94] : memref<2x24xf32, #tpu.memory_space<vmem>>, vector<1x8xf32>
    tpu.vector_store %arg8[%c1_93, %c16_94], %198 {strides = array<i32>} : memref<2x24xf32, #tpu.memory_space<vmem>>, vector<1x8xf32>,
    return
  }
  func.func @transform_0(%arg0: i32) -> (i32, i32) {
    %c0_i32 = arith.constant 0 : i32
    %c0_i32_0 = arith.constant 0 : i32
    return %arg0, %c0_i32 : i32, i32
  }
  func.func @transform_1(%arg0: i32) -> (i32, i32) {
    %c0_i32 = arith.constant 0 : i32
    %c0_i32_0 = arith.constant 0 : i32
    %c0_i32_1 = arith.constant 0 : i32
    return %c0_i32, %c0_i32_0 : i32, i32
  }
  func.func @transform_2(%arg0: i32) -> (i32, i32) {
    %c0_i32 = arith.constant 0 : i32
    %c0_i32_0 = arith.constant 0 : i32
    %c0_i32_1 = arith.constant 0 : i32
    return %c0_i32, %c0_i32_0 : i32, i32
  }
  func.func @transform_3(%arg0: i32) -> (i32, i32, i32) {
    %c0_i32 = arith.constant 0 : i32
    %c0_i32_0 = arith.constant 0 : i32
    %c0_i32_1 = arith.constant 0 : i32
    %c0_i32_2 = arith.constant 0 : i32
    return %c0_i32, %c0_i32_0, %c0_i32_1 : i32, i32, i32
  }
  func.func @transform_4(%arg0: i32) -> (i32, i32, i32) {
    %c0_i32 = arith.constant 0 : i32
    %c0_i32_0 = arith.constant 0 : i32
    %c0_i32_1 = arith.constant 0 : i32
    %c0_i32_2 = arith.constant 0 : i32
    return %c0_i32, %c0_i32_0, %c0_i32_1 : i32, i32, i32
  }
  func.func @transform_5(%arg0: i32) -> (i32, i32) {
    %c0_i32 = arith.constant 0 : i32
    %c0_i32_0 = arith.constant 0 : i32
    %c0_i32_1 = arith.constant 0 : i32
    return %c0_i32, %c0_i32_0 : i32, i32
  }
  func.func @transform_6(%arg0: i32) -> (i32, i32) {
    %c0_i32 = arith.constant 0 : i32
    %c0_i32_0 = arith.constant 0 : i32
    return %arg0, %c0_i32 : i32, i32
  }
  func.func @transform_7(%arg0: i32) -> (i32, i32) {
    %c0_i32 = arith.constant 0 : i32
    %c0_i32_0 = arith.constant 0 : i32
    %c0_i32_1 = arith.constant 0 : i32
    return %c0_i32, %c0_i32_0 : i32, i32
  }
}

</mosaic_0001>

<bundles_post_ra>
// kernel: inception_forward.5
= control target key start
LH: loop header
LB: loop body
LE: loop exit
PB: predicated region body
PF: predicated region fallthrough
CT: control target
= control target key end

     0   :  { %s281_s9 = smov 0   ;;  %s304_s0 = inlined_call_operand.vmem [shape: f32[32,32], index: 0, kind: input, shape index: {}, may-alias: {0,2}]   ;;  %s305_s1 = inlined_call_operand.vmem [shape: f32[2,24], index: 1, kind: input, shape index: {}]   ;;  %s306_s2 = inlined_call_operand.vmem [shape: f32[32,32], index: 2, kind: output, shape index: {}, may-alias: {0,2}]  }
   0x1 LB: > { %s235_s10 = sadd.s32 4294967295, %s263_s9   ;;  %p239_p0 = scmp.ge.s32.totalorder %s263_s9, 1  ;;  %s263_s9 = sphi %s281_s9, %s12_s9  }
   0x2   : > { %p113_p1 = scmp.lt.s32.totalorder %s263_s9, 3 }
   0x4   : > { %p114_p2 = pnand %p239_p0, %p113_p1 }
   0x5   : > { %v244_v0 = vld [vmem:[%s305_s1] ss:$0 sm:$0xff] (!%p114_p2)  ;;  %s240_s13 = sshll.u32 (!%p114_p2), %s235_s10, 1  ;;  %s265_s14 = smov (!%p114_p2), 8   ;;  %v245_v1 = vld [vmem:[%s305_s1 + $0x1] ss:$0 sm:$0xff] (!%p114_p2) }
   0x6   : > { %117 = sbr.rel (%p114_p2) target bundleno = 130 (0x82), region = 28  ;;  %158 = vrot.lane.b32.xlu0 (!%p114_p2), %v244_v0, %s265_s14  ;;  %p136_p3 = scmp.lt.s32.totalorder (!%p114_p2), %s240_s13, 3  ;;  %vm149_vm0 = vcmask (!%p114_p2), 64512   ;;  %vm176_vm1 = vcmask (!%p114_p2), 261184  }
   0xa   : > { %169 = vrot.lane.b32.xlu0 (!%p114_p2), %v245_v1, %s265_s14 }
   0xd   : > { %s308_s13 = smov (!%p136_p3, %s240_s13), 3 }
   0xe   : > { %s241_s17 = sshll.u32 %s308_s13, 3 }
   0xf   : > { %s139_s20 = scalar_lea.vmem %s304_s0, %s241_s17  ;;  %s145_s23 = scalar_lea.vmem %s306_s2, %s241_s17 }
  0x10   : > { %v147_v2 = vld [vmem:[%s139_s20] sm:$0xff]  ;;  %v148_v3 = vld [vmem:[%s139_s20 + $0x8] sm:$0xff] }
  0x11   : > { %150 = vst.msk [vmem:[%s145_s23] sm:$0xff] %vm149_vm0, %v147_v2  ;;  %151 = vst.msk [vmem:[%s145_s23 + $0x8] sm:$0xff] %vm149_vm0, %v148_v3 }
  0x78   : > { %v159_v4 = vpop.permute.xlu0 %158 }
  0x79   : > { %v161_v5 = vmul.f32 %v159_v4, %v147_v2  ;;  %v162_v6 = vmul.f32 %v159_v4, %v148_v3 }
  0x7c   : > { %v170_v7 = vpop.permute.xlu0 %169 }
  0x7d   : > { %v172_v8 = vadd.f32 %v170_v7, %v161_v5  ;;  %v173_v9 = vadd.f32 %v170_v7, %v162_v6 }
  0x7f   : > { %v174_v10 = vmax.f32 %v172_v8, 0.0  ;;  %v175_v11 = vmax.f32 %v173_v9, 0.0 }
  0x81   : > { %177 = vst.msk [vmem:[%s145_s23] sm:$0xff] %vm176_vm1, %v174_v10  ;;  %178 = vst.msk [vmem:[%s145_s23 + $0x8] sm:$0xff] %vm176_vm1, %v175_v11 }
  0x82 PF: > { %s12_s9 = sadd.s32 1, %s263_s9  }
  0x83   : > { %p9_p4 = scmp.ge.s32.totalorder %s12_s9, 4  }
  0x85   :  { %11 = sbr.rel (!%p9_p4) target bundleno = 1 (0x1), region = 58 }

// kernel: inception_forward.3
= control target key start
LH: loop header
LB: loop body
LE: loop exit
PB: predicated region body
PF: predicated region fallthrough
CT: control target
= control target key end

     0   :  { %s308_s9 = smov 0   ;;  %s340_s0 = inlined_call_operand.vmem [shape: bf16[32,4], index: 0, kind: input, shape index: {}]   ;;  %s341_s1 = inlined_call_operand.vmem [shape: bf16[4,16], index: 1, kind: input, shape index: {}]   ;;  %s342_s2 = inlined_call_operand.vmem [shape: f32[2,16], index: 2, kind: output, shape index: {}]  }
   0x1 LB: > { %s251_s10 = sadd.s32 4294967295, %s288_s9   ;;  %p254_p0 = scmp.ge.s32.totalorder %s288_s9, 1  ;;  %s288_s9 = sphi %s308_s9, %s12_s9  }
   0x2   : > { %p108_p1 = scmp.lt.s32.totalorder %s288_s9, 3 }
   0x4   : > { %p109_p2 = pnand %p254_p0, %p108_p1 }
   0x5   : > { %s255_s11 = sshll.u32 (!%p109_p2), %s251_s10, 1  ;;  %p257_p4 = scmp.ne.s32.totalorder (!%p109_p2), %s251_s10, 0 }
   0x6   : > { %112 = sbr.rel (%p109_p2) target bundleno = 259 (0x103), region = 28  ;;  %p126_p3 = scmp.lt.s32.totalorder (!%p109_p2), %s255_s11, 3 }
   0xd   : > { %s344_s11 = smov (!%p126_p3, %s255_s11), 3  ;;  %135 = sbr.rel (%p257_p4) target bundleno = 20 (0x14), region = 32 }
   0xe   : > { %s256_s12 = sshll.u32 %s344_s11, 2  ;;  %vm136_vm0 = vcmask (!%p257_p4), 123904   ;;  %v290_v0 = vmov (!%p257_p4), 0.0  }
   0xf   : > { %s129_s15 = scalar_lea.vmem %s340_s0, %s256_s12  ;;  %137 = vst.msk [vmem:[%s342_s2] sm:$0x3] (!%p257_p4), %vm136_vm0, %v290_v0 }
  0x14 PF: > { %v140_v1 = vld [vmem:[%s341_s1] sm:$0x3]  ;;  %vm150_vm1 = vcmask 1041408   ;;  %v291_v2 = vmov 0.0   ;;  %vm292_vm2 = vmmov 0   ;;  %vm146_vm3 = vcmask 31744  }
  0x15   : > { %264 = vmatprep.subr.bf16.mxu0 %v291_v2  ;;  %v152_v3 = vsel %vm150_vm1, %v140_v1, 0  ;;  %266 = vmatprep.mubr.msk.bf16.mxu0 %vm292_vm2, %v291_v2  ;;  %v281_v4 = vld [vmem:[%s129_s15] sm:$0xff]   ;;  %vm196_vm4 = vcmask 130048   ;;  %vm207_vm5 = vcmask 122880  }
  0x16   : > { %265 = vmatpush3.bf16.msra.mxu0 %v152_v3  ;;  %v195_v26 = vld [vmem:[%s342_s2] sm:$0x1]  ;;  %v209_v29 = vld [vmem:[%s342_s2 + $0x1] sm:$0x1] }
  0x19   : > { %267 = vmatmul.mubr.msk.bf16.vlgmr.msra.gmra.mrb[0].mxu0 %vm146_vm3, %v281_v4 }
  0xec   : > { %v188_v5 = vpop.f32.mrb[0].mxu0 }
  0xed   : > { %v210_v6 = vmul.f32 %v188_v5, %v188_v5  ;;  %v268_v7 = vpop.f32.mrb[1].mxu0  ;;  %v197_v9 = vsel %vm196_vm4, %v188_v5, 0.0 }
  0xee   : > { %v191_v8 = vpop.f32.mrb[2].mxu0 }
  0xef   : > { %v198_v10 = vsel %vm196_vm4, %v191_v8, 0.0  ;;  %v211_v11 = vmul.f32 %v191_v8, %v191_v8  ;;  %v269_v12 = vpop.f32.mrb[3].mxu0  ;;  %v212_v14 = vsel %vm196_vm4, %v210_v6, 0.0 }
  0xf0   : > { %v199_v13 = vadd.f32 %v198_v10, %v197_v9 }
  0xf1   : > { %v213_v15 = vsel %vm196_vm4, %v211_v11, 0.0 }
  0xf2   : > { %v200_v16 = vrot.slane %v199_v13, 4  ;;  %v214_v17 = vadd.f32 %v213_v15, %v212_v14 }
  0xf4   : > { %v201_v18 = vadd.f32 %v200_v16, %v199_v13  ;;  %v215_v19 = vrot.slane %v214_v17, 4 }
  0xf6   : > { %v202_v20 = vrot.slane %v201_v18, 2  ;;  %v216_v21 = vadd.f32 %v215_v19, %v214_v17 }
  0xf8   : > { %v203_v22 = vadd.f32 %v202_v20, %v201_v18  ;;  %v217_v23 = vrot.slane %v216_v21, 2 }
  0xfa   : > { %v204_v24 = vrot.slane %v203_v22, 1  ;;  %v218_v25 = vadd.f32 %v217_v23, %v216_v21 }
  0xfc   : > { %v205_v27 = vadd.f32 %v204_v24, %v203_v22  ;;  %v219_v28 = vrot.slane %v218_v25, 1 }
  0xfe   : > { %v206_v30 = vadd.f32 %v205_v27, %v195_v26  ;;  %v220_v31 = vadd.f32 %v219_v28, %v218_v25 }
 0x100   : > { %208 = vst.msk [vmem:[%s342_s2] sm:$0x1] %vm207_vm5, %v206_v30  ;;  %v221_v32 = vadd.f32 %v220_v31, %v209_v29 }
 0x102   : > { %222 = vst.msk [vmem:[%s342_s2 + $0x1] sm:$0x1] %vm207_vm5, %v221_v32 }
 0x103 PF: > { %s12_s9 = sadd.s32 1, %s288_s9  }
 0x104   : > { %p9_p5 = scmp.ge.s32.totalorder %s12_s9, 4  }
 0x106   :  { %11 = sbr.rel (!%p9_p5) target bundleno = 1 (0x1), region = 58 }

// kernel: inception_forward.4
= control target key start
LH: loop header
LB: loop body
LE: loop exit
PB: predicated region body
PF: predicated region fallthrough
CT: control target
= control target key end

     0   :  { %s1495_s24 = smov 0   ;;  %s1764_s0 = inlined_call_operand.vmem [shape: bf16[32,4], index: 0, kind: input, shape index: {}]   ;;  %s1765_s1 = inlined_call_operand.vmem [shape: bf16[4,16], index: 1, kind: input, shape index: {}]   ;;  %s1766_s2 = inlined_call_operand.vmem [shape: f32[2,16], index: 2, kind: input, shape index: {}]   ;;  %s1767_s3 = inlined_call_operand.vmem [shape: bf16[3,4,8], index: 3, kind: input, shape index: {}]   ;;  %s1768_s4 = inlined_call_operand.vmem [shape: bf16[5,4,8], index: 4, kind: input, shape index: {}]   ;;  %s1769_s5 = inlined_call_operand.vmem [shape: bf16[4,8], index: 5, kind: input, shape index: {}]   ;;  %s1770_s6 = inlined_call_operand.vmem [shape: f32[32,32], index: 6, kind: output, shape index: {0}]   ;;  %s1771_s7 = inlined_call_operand.vmem [shape: f32[2,24], index: 7, kind: output, shape index: {1}]  }
   0x1 LB: > { %s1259_s25 = sadd.s32 4294967295, %s1439_s24   ;;  %p1263_p0 = scmp.ge.s32.totalorder %s1439_s24, 1  ;;  %s1439_s24 = sphi %s1495_s24, %s18_s24  }
   0x2   : > { %p236_p1 = scmp.lt.s32.totalorder %s1439_s24, 3 }
   0x4   : > { %p237_p2 = pnand %p1263_p0, %p236_p1 }
   0x5   : > { %s1264_s26 = sshll.u32 (!%p237_p2), %s1259_s25, 1  ;;  %p1268_p4 = scmp.ne.s32.totalorder (!%p237_p2), %s1259_s25, 0 }
   0x6   : > { %240 = sbr.rel (%p237_p2) target bundleno = 773 (0x305), region = 44  ;;  %p269_p3 = scmp.lt.s32.totalorder (!%p237_p2), %s1264_s26, 3 }
   0xd   : > { %s1787_s26 = smov (!%p269_p3, %s1264_s26), 3  ;;  %287 = sbr.rel (%p1268_p4) target bundleno = 20 (0x14), region = 48 }
   0xe   : > { %s1265_s27 = sshll.u32 %s1787_s26, 2  ;;  %s1267_s28 = sshll.u32 %s1787_s26, 3  ;;  %vm288_vm0 = vcmask (!%p1268_p4), 189440   ;;  %v1441_v0 = vmov (!%p1268_p4), 0.0  }
   0xf   : > { %s272_s8 = scalar_lea.vmem %s1764_s0, %s1265_s27  ;;  %s1509_s11 = scalar_lea.vmem %s1770_s6, %s1267_s28  ;;  %289 = vst.msk [vmem:[%s1771_s7] sm:$0x3] (!%p1268_p4), %vm288_vm0, %v1441_v0 }
  0x14 PF: > { %v319_v1 = vld [vmem:[%s1765_s1] sm:$0x3]  ;;  %vm329_vm1 = vcmask 1041408   ;;  %v1442_v2 = vmov 0.0   ;;  %vm1443_vm2 = vmmov 0   ;;  %vm325_vm3 = vcmask 31744  }
  0x15   : > { %1326 = vmatprep.subr.bf16.mxu1 %v1442_v2  ;;  %v331_v3 = vsel %vm329_vm1, %v319_v1, 0  ;;  %1328 = vmatprep.mubr.msk.bf16.mxu1 %vm1443_vm2, %v1442_v2  ;;  %v1521_v4 = vld [vmem:[%s272_s8] sm:$0xf]  ;;  %v1523_v5 = vld [vmem:[%s272_s8 + $0x4] sm:$0xf]  ;;  %v292_v9 = vlaneseq  ;;  %vm1444_vm5 = vmmov 1  }
  0x16   : > { %1327 = vmatpush3.bf16.msra.mxu1 %v331_v3  ;;  %v1527_v6 = vcombine.low %v1521_v4, %v1523_v5  ;;  %1350 = vmatprep.subr.bf16.mxu0 %v1442_v2  ;;  %v624_v7 = vld [vmem:[%s1768_s4] sm:$0x3]  ;;  %vm416_vm6 = vmpackc.low %vm1444_vm5, %vm1444_vm5  ;;  %v1445_v23 = vmov 0   ;;  %vm390_vm9 = vcmask 64512   ;;  %vm405_vm12 = vcmask 1040384   ;;  %s1446_s25 = smov 116  }
  0x17   : > { %1352 = vmatprep.mubr.msk.bf16.mxu0 %vm1443_vm2, %v1442_v2  ;;  %1332 = vmatprep.subr.bf16.mxu1 %v1442_v2  ;;  %v632_v8 = vsel %vm329_vm1, %v624_v7, 0  ;;  %v1543_v10 = vshrl.u32 %v292_v9, 7  ;;  %v1271_v13 = vld [vmem:[%s1766_s2] ss:$0 sm:$0xff]  ;;  %v1272_v15 = vld [vmem:[%s1766_s2 + $0x1] ss:$0 sm:$0xff] }
  0x18   : > { %1351 = vmatpush3.bf16.msra.mxu0 %v632_v8  ;;  %v418_v24 = vsel %vm416_vm6, 65537, %v1445_v23  ;;  %v424_v28 = vld [vmem:[%s1767_s3] sm:$0x3]  ;;  %vm406_vm13 = vsmask.f32 256  ;;  %vm529_vm6 = vcmask 1047552  }
  0x19   : > { %1329 = vmatmul.mubr.msk.bf16.vlgmr.msra.gmra.mrb[0].mxu1 %vm325_vm3, %v1527_v6  ;;  %1356 = vmatprep.subr.bf16.mxu0 %v1442_v2  ;;  %v299_v11 = vand.u32 15, %v1543_v10  ;;  %v294_v30 = vadd.s32 8, %v1543_v10  ;;  %v432_v31 = vsel %vm329_vm1, %v424_v28, 0  ;;  %vm1580_vm15 = vmand %vm405_vm12, %vm406_vm13  ;;  %s1447_s26 = smov 125   ;;  %s1448_s27 = smov 120   ;;  %v905_v60 = vand.u32 127, %v292_v9 }
  0x1a   : > { %1334 = vmatprep.mubr.msk.bf16.mxu1 %vm1443_vm2, %v1442_v2  ;;  %1333 = vmatpush3.bf16.msra.mxu1 %v432_v31  ;;  %s1449_s28 = smov 127   ;;  %s1450_s29 = smov 1   ;;  %v1280_v61 = vld [vmem:[%s1768_s4 + $0x4] sm:$0x3]  ;;  %v922_v0 = vsub.s32 0, %v1543_v10 }
  0x1b   : > { %vm1546_vm4 = vcmp.ge.s32.totalorder %v299_v11, 2  ;;  %vm1559_vm8 = vcmp.ge.s32.totalorder %v299_v11, 1  ;;  %1338 = vmatprep.subr.bf16.mxu1 %v1442_v2  ;;  %v306_v35 = vand.u32 15, %v294_v30  ;;  %s1451_s30 = smov 3   ;;  %v681_v62 = vsel %vm329_vm1, %v1280_v61, 0  ;;  %s1452_s23 = smov 8  }
  0x1c   : > { %vm615_vm7 = vmpackc.low %vm1546_vm4, %vm1546_vm4  ;;  %vm906_vm13 = vcmp.ge.s32.totalorder %v905_v60, 1  ;;  %v1273_v7 = vld [vmem:[%s1767_s3 + $0x2] sm:$0x3]  ;;  %v1286_v30 = vld [vmem:[%s1768_s4 + $0x6] sm:$0x3]  ;;  %s1453_s10 = smov 16  }
  0x1d   : > { %v617_v25 = vsel %vm615_vm7, 65537, %v1445_v23  ;;  %vm415_vm10 = vmpackc.low %vm1559_vm8, %vm1559_vm8  ;;  %vm534_vm14 = vcmp.lt.s32.totalorder %v306_v35, 15  ;;  %vm1590_vm5 = vcmp.lt.s32.totalorder %v306_v35, 14  ;;  %vm530_vm7 = vsmask.f32 7424  ;;  %s1454_s12 = smov 24  }
  0x1e   : > { %v1281_v29 = vcombine.low %v617_v25, %v418_v24  ;;  %v417_v33 = vsel %vm415_vm10, 65537, %v1445_v23  ;;  %vm540_vm4 = vmpackc.low %vm534_vm14, %vm534_vm14  ;;  %v1284_v8 = vld [vmem:[%s1768_s4 + $0x2] sm:$0x3]  ;;  %v482_v11 = vsel %vm329_vm1, %v1273_v7, 0  ;;  %v785_v35 = vsel %vm329_vm1, %v1286_v30, 0 }
  0x1f   : > { %v1274_v38 = vcombine.low %v417_v33, %v418_v24  ;;  %v542_v49 = vsel %vm540_vm4, 65537, %v1445_v23  ;;  %vm842_vm8 = vmpackc.low %vm1590_vm5, %vm1590_vm5  ;;  %vm935_vm4 = vcmp.lt.s32.totalorder %v905_v60, 3 }
  0x20   : > { %vm622_vm11 = vcmp.ne.s16.totalorder %v1281_v29, 0  ;;  %v1277_v51 = vcombine.low %v418_v24, %v542_v49  ;;  %vm1603_vm10 = vmand %vm529_vm6, %vm530_vm7  ;;  %v844_v53 = vsel %vm842_vm8, 65537, %v1445_v23  ;;  %vm911_vm6 = vcmask 7168  }
  0x21   : > { %vm1584_vm0 = vcmp.ne.s16.totalorder %v1274_v38, 0  ;;  %v1288_v56 = vcombine.low %v418_v24, %v844_v53  ;;  %vm918_vm14 = vmpackc.low %vm906_vm13, %vm906_vm13  ;;  %vm940_vm8 = vcmask 23552   ;;  %v1289_v53 = vld [vmem:[%s1768_s4 + $0x8] sm:$0x3] }
  0x22   : > { %vm947_vm5 = vmpackc.low %vm935_vm4, %vm935_vm4  ;;  %v859_v52 = vsel %vm329_vm1, %v1289_v53, 0 }
  0x23   : > { %vm848_vm12 = vcmp.ne.s16.totalorder %v1288_v56, 0 }
  0xec   : > { %v367_v14 = vpop.f32.mrb[0].mxu1 }
  0xed   : > { %v379_v16 = vmul.f32 %v1271_v13, %v367_v14  ;;  %v1330_v17 = vpop.f32.mrb[1].mxu1  ;;  %v732_v14 = vsel %vm329_vm1, %v1284_v8, 0 }
  0xee   : > { %v370_v18 = vpop.f32.mrb[2].mxu1 }
  0xef   : > { %v386_v20 = vadd.f32 %v1272_v15, %v379_v16  ;;  %v380_v21 = vmul.f32 %v1271_v13, %v370_v18  ;;  %v1331_v22 = vpop.f32.mrb[3].mxu1  ;;  %v948_v13 = vsel %vm947_vm5, 65537, %v1445_v23 }
  0xf1   : > { %v388_v26 = vmax.f32 %v386_v20, 0.0  ;;  %v387_v27 = vadd.f32 %v1272_v15, %v380_v21  ;;  %v952_v15 = vrot.slane %v948_v13, %v922_v0 }
  0xf3   : > { %391 = vst.msk [vmem:[%s1509_s11] sm:$0xff] %vm390_vm9, %v388_v26  ;;  %v389_v32 = vmax.f32 %v387_v27, 0.0 }
  0xf5   : > { %v393_v34 = vpack.c.bf16 %v389_v32, %v388_v26  ;;  %392 = vst.msk [vmem:[%s1509_s11 + $0x8] sm:$0xff] %vm390_vm9, %v389_v32 }
  0xf7   : > { %v604_v36 = vrot.slane %v393_v34, 7  ;;  %v397_v37 = vshrl.u32 %v393_v34, 16  ;;  %v401_v41 = vshll.u32 %v393_v34, 16  ;;  %v830_v58 = vrot.slane %v393_v34, 1 }
  0xf9   : > { %v623_v39 = vsel %vm622_vm11, %v604_v36, 0  ;;  %v399_v40 = vrot.slane %v397_v37, 7  ;;  %v525_v48 = vrot.slane %v401_v41, 1  ;;  %vm1611_vm11 = vcmp.ne.s16.totalorder %v1277_v51, 0 }
  0xfa   : > { %626 = vrot.lane.b32.xlu0 %v623_v39, %s1446_s25  ;;  %v849_v59 = vsel %vm848_vm12, %v830_v58, 0  ;;  %vm953_vm12 = vcmp.ne.s16.totalorder %v952_v15, 0 }
  0xfb   : > { %v403_v43 = vor.u32 %v401_v41, %v399_v40  ;;  %v526_v50 = vor.u32 %v525_v48, %v397_v37 }
  0xfd   : > { %v408_v45 = vsel %vm1580_vm15, %v399_v40, %v403_v43  ;;  %v532_v54 = vsel %vm1603_vm10, %v526_v50, %v525_v48 }
  0xfe   : > { %675 = vrot.lane.b32.xlu0 %v393_v34, %s1446_s25  ;;  %v423_v47 = vsel %vm1584_vm0, %v408_v45, 0  ;;  %v547_v57 = vsel %vm1611_vm11, %v532_v54, 0 }
  0xff   : > { %726 = vrot.lane.b32.xlu1 %v423_v47, %s1446_s25 }
 0x102   : > { %907 = vrot.lane.b32.xlu0 %v1527_v6, %s1447_s26 }
 0x103   : > { %426 = vrot.lane.b32.xlu1 %v423_v47, %s1448_s27  ;;  %v1014_v47 = vld [vmem:[%s1769_s5] sm:$0x3] }
 0x104   : > { %v1024_v54 = vsel %vm329_vm1, %v1014_v47, 0 }
 0x106   : > { %936 = vrot.lane.b32.xlu0 %v1527_v6, %s1449_s28 }
 0x107   : > { %909 = vrot.lane.b32.xlu1 %v1527_v6, %s1450_s29 }
 0x10a   : > { %779 = vrot.lane.b32.xlu0 %v547_v57, %s1446_s25 }
 0x10b   : > { %938 = vrot.lane.b32.xlu1 %v1527_v6, %s1451_s30  ;;  %v919_v6 = vsel %vm918_vm14, 65537, %v1445_v23  ;;  %v1278_v23 = vld [vmem:[%s1767_s3 + $0x4] sm:$0x3] }
 0x10c   : > { %v923_v9 = vrot.slane %v919_v6, %v922_v0  ;;  %v557_v31 = vsel %vm329_vm1, %v1278_v23, 0  ;;  %vm1111_vm1 = vcmask 57344  }
 0x10e   : > { %853 = vrot.lane.b32.xlu0 %v849_v59, %s1446_s25  ;;  %vm924_vm7 = vcmp.ne.s16.totalorder %v923_v9, 0 }
 0x10f   : > { %476 = vrot.lane.b32.xlu1 %v393_v34, %s1448_s27 }
 0x113   : > { %551 = vrot.lane.b32.xlu1 %v547_v57, %s1448_s27 }
 0x16c   : > { %v627_v63 = vpop.permute.xlu0 %626 }
 0x16d   : > { %1353 = vmatmul.mubr.msk.bf16.vlgmr.msra.gmra.mrb[0].mxu0 %vm325_vm3, %v627_v63 }
 0x16e   : > { %1357 = vmatpush3.bf16.msra.mxu0 %v681_v62  ;;  %1358 = vmatprep.mubr.msk.bf16.mxu0 %vm1443_vm2, %v1442_v2 }
 0x16f   : > { %1362 = vmatprep.subr.bf16.mxu0 %v1442_v2 }
 0x170   : > { %v676_v1 = vpop.permute.xlu0 %675 }
 0x171   : > { %v727_v3 = vpop.permute.xlu1 %726 }
 0x174   : > { %v908_v10 = vpop.permute.xlu0 %907 }
 0x175   : > { %v427_v12 = vpop.permute.xlu1 %426 }
 0x176   : > { %1335 = vmatmul.mubr.msk.bf16.vlgmr.msra.gmra.mrb[4].mxu1 %vm325_vm3, %v427_v12 }
 0x177   : > { %1339 = vmatpush3.bf16.msra.mxu1 %v482_v11  ;;  %1340 = vmatprep.mubr.msk.bf16.mxu1 %vm1443_vm2, %v1442_v2 }
 0x178   : > { %1344 = vmatprep.subr.bf16.mxu1 %v1442_v2  ;;  %v937_v21 = vpop.permute.xlu0 %936 }
 0x179   : > { %1359 = vmatmul.mubr.msk.bf16.vlgmr.msra.gmra.mrb[0].mxu0 %vm325_vm3, %v676_v1  ;;  %v910_v16 = vpop.permute.xlu1 %909 }
 0x17a   : > { %1363 = vmatpush3.bf16.msra.mxu0 %v732_v14  ;;  %v914_v17 = vsel %vm911_vm6, %v908_v10, %v910_v16  ;;  %1364 = vmatprep.mubr.msk.bf16.mxu0 %vm1443_vm2, %v1442_v2 }
 0x17b   : > { %v925_v18 = vsel %vm924_vm7, %v914_v17, 4048220490  ;;  %1368 = vmatprep.subr.bf16.mxu0 %v1442_v2 }
 0x17c   : > { %v1291_v19 = vcombine.low %v925_v18, %v925_v18  ;;  %v1292_v20 = vcombine.high %v925_v18, %v925_v18  ;;  %v780_v62 = vpop.permute.xlu0 %779 }
 0x17d   : > { %v939_v22 = vpop.permute.xlu1 %938 }
 0x17e   : > { %v933_v24 = vmax.bf16 %v1291_v19, %v1521_v4  ;;  %v934_v25 = vmax.bf16 %v1292_v20, %v1523_v5  ;;  %v943_v26 = vsel %vm940_vm8, %v937_v21, %v939_v22 }
 0x17f   : > { %v954_v27 = vsel %vm953_vm12, %v943_v26, 4048220490 }
 0x180   : > { %v1293_v28 = vcombine.low %v954_v27, %v954_v27  ;;  %v1294_v29 = vcombine.high %v954_v27, %v954_v27 }
 0x181   : > { %v477_v32 = vpop.permute.xlu1 %476 }
 0x182   : > { %v962_v33 = vmax.bf16 %v1293_v28, %v933_v24  ;;  %v963_v34 = vmax.bf16 %v1294_v29, %v934_v25  ;;  %1341 = vmatmul.mubr.msk.bf16.vlgmr.msra.gmra.mrb[4].mxu1 %vm325_vm3, %v477_v32 }
 0x183   : > { %1345 = vmatpush3.bf16.msra.mxu1 %v557_v31  ;;  %1346 = vmatprep.mubr.msk.bf16.mxu1 %vm1443_vm2, %v1442_v2 }
 0x184   : > { %v1295_v4 = vcombine.low %v963_v34, %v963_v34  ;;  %v1296_v5 = vcombine.low %v962_v33, %v963_v34  ;;  %v1299_v36 = vcombine.low %v962_v33, %v962_v33  ;;  %1380 = vmatprep.subr.bf16.mxu1 %v1442_v2 }
 0x185   : > { %1365 = vmatmul.mubr.msk.bf16.vlgmr.msra.gmra.mrb[0].mxu0 %vm325_vm3, %v727_v3  ;;  %v552_v58 = vpop.permute.xlu1 %551  ;;  %v854_v3 = vpop.permute.xlu0 %853 }
 0x186   : > { %v968_v37 = vshrl.u32 %v1295_v4, 16  ;;  %v976_v38 = vshrl.u32 %v1296_v5, 16  ;;  %v979_v39 = vshll.u32 %v1296_v5, 16  ;;  %v999_v40 = vshll.u32 %v1299_v36, 16  ;;  %1369 = vmatpush3.bf16.msra.mxu0 %v785_v35  ;;  %1370 = vmatprep.mubr.msk.bf16.mxu0 %vm1443_vm2, %v1442_v2  ;;  %v1100_v36 = vld [vmem:[%s1771_s7] sm:$0x1] }
 0x187   : > { %1374 = vmatprep.subr.bf16.mxu0 %v1442_v2 }
 0x188   : > { %v970_v41 = vrot.slane %v968_v37, 3  ;;  %v978_v43 = vrot.slane %v976_v38, 7  ;;  %v994_v45 = vrot.slane %v979_v39, 1  ;;  %v1001_v46 = vrot.slane %v999_v40, 1 }
 0x18a   : > { %v981_v48 = vor.u32 %v979_v39, %v978_v43  ;;  %v995_v49 = vor.u32 %v994_v45, %v976_v38 }
 0x18c   : > { %v983_v50 = vsel %vm1580_vm15, %v970_v41, %v981_v48  ;;  %v1003_v51 = vsel %vm1603_vm10, %v995_v49, %v1001_v46  ;;  %v1113_v41 = vld [vmem:[%s1771_s7 + $0x1] sm:$0x1]  ;;  %vm1177_vm15 = vcmask 188544  }
 0x18d   : > { %v984_v56 = vsel %vm1584_vm0, %v983_v50, 4048220490  ;;  %v1004_v57 = vsel %vm1611_vm11, %v1003_v51, 4048220490  ;;  %vm1097_vm0 = vcmask 261312  }
 0x18e   : > { %v1297_v59 = vcombine.low %v984_v56, %v984_v56  ;;  %v1298_v60 = vcombine.high %v984_v56, %v984_v56  ;;  %v1300_v42 = vcombine.low %v1004_v57, %v1004_v57  ;;  %v1301_v61 = vcombine.high %v1004_v57, %v1004_v57  ;;  %1347 = vmatmul.mubr.msk.bf16.vlgmr.msra.gmra.mrb[4].mxu1 %vm325_vm3, %v552_v58 }
 0x18f   : > { %1381 = vmatpush3.bf16.msra.mxu1 %v1024_v54  ;;  %1382 = vmatprep.mubr.msk.bf16.mxu1 %vm1443_vm2, %v1442_v2 }
 0x190   : > { %v992_v63 = vmax.bf16 %v1297_v59, %v962_v33  ;;  %v993_v44 = vmax.bf16 %v1298_v60, %v963_v34 }
 0x191   : > { %1371 = vmatmul.mubr.msk.bf16.vlgmr.msra.gmra.mrb[0].mxu0 %vm325_vm3, %v780_v62 }
 0x192   : > { %v1012_v55 = vmax.bf16 %v1300_v42, %v992_v63  ;;  %v1013_v0 = vmax.bf16 %v1301_v61, %v993_v44  ;;  %1375 = vmatpush3.bf16.msra.mxu0 %v859_v52  ;;  %1376 = vmatprep.mubr.msk.bf16.mxu0 %vm1443_vm2, %v1442_v2  ;;  %vm1075_vm2 = vcmask 130112  }
 0x194   : > { %v1302_v1 = vcombine.low %v1012_v55, %v1013_v0 }
 0x196   : > { %1383 = vmatmul.mubr.msk.bf16.vlgmr.msra.gmra.mrb[8].mxu1 %vm325_vm3, %v1302_v1 }
 0x19d   : > { %1377 = vmatmul.mubr.msk.bf16.vlgmr.msra.gmra.mrb[0].mxu0 %vm325_vm3, %v854_v3  ;;  %vm1142_vm3 = vcmask 122944  }
 0x261   : > { %v593_v6 = vpop.f32.mrb[4].mxu1 }
 0x262   : > { %v1114_v7 = vmul.f32 %v593_v6, %v593_v6  ;;  %1069 = vrot.lane.b32.xlu0 %v593_v6, %s1452_s23  ;;  %v1348_v8 = vpop.f32.mrb[5].mxu1  ;;  %v1101_v11 = vsel %vm390_vm9, %v593_v6, 0.0 }
 0x263   : > { %v596_v9 = vpop.f32.mrb[6].mxu1 }
 0x264   : > { %v1102_v12 = vsel %vm390_vm9, %v596_v9, 0.0  ;;  %v1115_v13 = vmul.f32 %v596_v9, %v596_v9  ;;  %1071 = vrot.lane.b32.xlu1 %v596_v9, %s1452_s23  ;;  %v1349_v2 = vpop.f32.mrb[7].mxu1  ;;  %v1116_v14 = vsel %vm390_vm9, %v1114_v7, 0.0 }
 0x265   : > { %v1103_v10 = vadd.f32 %v1102_v12, %v1101_v11 }
 0x266   : > { %v1117_v15 = vsel %vm390_vm9, %v1115_v13, 0.0 }
 0x267   : > { %v1104_v16 = vrot.slane %v1103_v10, 4  ;;  %v1118_v17 = vadd.f32 %v1117_v15, %v1116_v14 }
 0x269   : > { %v1105_v18 = vadd.f32 %v1104_v16, %v1103_v10  ;;  %v1119_v19 = vrot.slane %v1118_v17, 4  ;;  %v1697_v20 = vpop.f32.mrb[8].mxu1 }
 0x26a   : > { %v1163_v21 = vsel %vm390_vm9, %v1697_v20, 0.0  ;;  %v1180_v22 = vmul.f32 %v1697_v20, %v1697_v20  ;;  %v1384_v23 = vpop.f32.mrb[9].mxu1 }
 0x26b   : > { %v1106_v24 = vrot.slane %v1105_v18, 2  ;;  %v1120_v25 = vadd.f32 %v1119_v19, %v1118_v17  ;;  %v1703_v26 = vpop.f32.mrb[10].mxu1 }
 0x26c   : > { %v1182_v27 = vsel %vm390_vm9, %v1180_v22, 0.0  ;;  %v1164_v28 = vsel %vm390_vm9, %v1703_v26, 0.0  ;;  %v1181_v29 = vmul.f32 %v1703_v26, %v1703_v26  ;;  %v1385_v30 = vpop.f32.mrb[11].mxu1 }
 0x26d   : > { %v1107_v31 = vadd.f32 %v1106_v24, %v1105_v18  ;;  %v1121_v32 = vrot.slane %v1120_v25, 2  ;;  %v1165_v33 = vadd.f32 %v1164_v28, %v1163_v21 }
 0x26e   : > { %v1183_v34 = vsel %vm390_vm9, %v1181_v29, 0.0 }
 0x26f   : > { %v1108_v35 = vrot.slane %v1107_v31, 1  ;;  %v1122_v4 = vadd.f32 %v1121_v32, %v1120_v25  ;;  %v1184_v5 = vadd.f32 %v1183_v34, %v1182_v27  ;;  %v1166_v53 = vrot.slane %v1165_v33, 4 }
 0x270   : > { %v895_v37 = vpop.f32.mrb[0].mxu0 }
 0x271   : > { %v1109_v38 = vadd.f32 %v1108_v35, %v1107_v31  ;;  %v1123_v39 = vrot.slane %v1122_v4, 1  ;;  %v1378_v40 = vpop.f32.mrb[1].mxu0  ;;  %v1128_v43 = vsel %vm390_vm9, %v895_v37, 0.0  ;;  %v1145_v45 = vmul.f32 %v895_v37, %v895_v37 }
 0x272   : > { %v898_v46 = vpop.f32.mrb[2].mxu0  ;;  %v1185_v59 = vrot.slane %v1184_v5, 4  ;;  %v1167_v61 = vadd.f32 %v1166_v53, %v1165_v33 }
 0x273   : > { %v1110_v47 = vadd.f32 %v1109_v38, %v1100_v36  ;;  %v1124_v48 = vadd.f32 %v1123_v39, %v1122_v4  ;;  %v1129_v49 = vsel %vm390_vm9, %v898_v46, 0.0  ;;  %v1146_v50 = vmul.f32 %v898_v46, %v898_v46  ;;  %v1379_v51 = vpop.f32.mrb[3].mxu0 }
 0x274   : > { %v1130_v54 = vadd.f32 %v1129_v49, %v1128_v43  ;;  %v1147_v57 = vsel %vm390_vm9, %v1145_v45, 0.0  ;;  %v1186_v55 = vadd.f32 %v1185_v59, %v1184_v5  ;;  %v1168_v3 = vrot.slane %v1167_v61, 2 }
 0x275   : > { %v1125_v56 = vadd.f32 %v1124_v48, %v1113_v41  ;;  %v1148_v58 = vsel %vm390_vm9, %v1146_v50, 0.0  ;;  %1112 = vst.msk [vmem:[%s1771_s7] sm:$0x1] %vm1111_vm1, %v1110_v47  ;;  %vm1086_vm9 = vcmask 195712  }
 0x276   : > { %v1131_v60 = vrot.slane %v1130_v54, 4  ;;  %v1149_v42 = vadd.f32 %v1148_v58, %v1147_v57  ;;  %v1187_v8 = vrot.slane %v1186_v55, 2  ;;  %v1169_v12 = vadd.f32 %v1168_v3, %v1167_v61 }
 0x277   : > { %1126 = vst.msk [vmem:[%s1771_s7 + $0x1] sm:$0x1] %vm1111_vm1, %v1125_v56 }
 0x278   : > { %v1132_v52 = vadd.f32 %v1131_v60, %v1130_v54  ;;  %v1150_v62 = vrot.slane %v1149_v42, 4  ;;  %v1188_v2 = vadd.f32 %v1187_v8, %v1186_v55  ;;  %v1170_v10 = vrot.slane %v1169_v12, 1 }
 0x27a   : > { %v1133_v63 = vrot.slane %v1132_v52, 2  ;;  %v1151_v44 = vadd.f32 %v1150_v62, %v1149_v42  ;;  %v1189_v14 = vrot.slane %v1188_v2, 1  ;;  %v1171_v15 = vadd.f32 %v1170_v10, %v1169_v12 }
 0x27c   : > { %v1134_v0 = vadd.f32 %v1133_v63, %v1132_v52  ;;  %v1152_v1 = vrot.slane %v1151_v44, 2  ;;  %v1190_v16 = vadd.f32 %v1189_v14, %v1188_v2  ;;  %v1127_v21 = vld [vmem:[%s1771_s7] sm:$0x1] }
 0x27e   : > { %v1135_v6 = vrot.slane %v1134_v0, 1  ;;  %v1153_v7 = vadd.f32 %v1152_v1, %v1151_v44 }
 0x280   : > { %v1136_v9 = vadd.f32 %v1135_v6, %v1134_v0  ;;  %v1154_v11 = vrot.slane %v1153_v7, 1 }
 0x282   : > { %1138 = vrot.lane.b32.xlu0 %v1136_v9, %s1452_s23  ;;  %v1155_v13 = vadd.f32 %v1154_v11, %v1153_v7 }
 0x284   : > { %1157 = vrot.lane.b32.xlu1 %v1155_v13, %s1452_s23 }
 0x286   : > { %1080 = vrot.lane.b32.xlu0 %v895_v37, %s1453_s10 }
 0x288   : > { %1082 = vrot.lane.b32.xlu1 %v898_v46, %s1453_s10 }
 0x28a   : > { %1173 = vrot.lane.b32.xlu0 %v1171_v15, %s1453_s10 }
 0x28c   : > { %1192 = vrot.lane.b32.xlu1 %v1190_v16, %s1453_s10 }
 0x28e   : > { %1091 = vrot.lane.b32.xlu0 %v1697_v20, %s1454_s12  ;;  %v1144_v20 = vld [vmem:[%s1771_s7 + $0x1] sm:$0x1] }
 0x290   : > { %1093 = vrot.lane.b32.xlu1 %v1703_v26, %s1454_s12 }
 0x2d4   : > { %v1070_v17 = vpop.permute.xlu0 %1069 }
 0x2d5   : > { %1076 = vst.msk [vmem:[%s1509_s11] sm:$0xff] %vm1075_vm2, %v1070_v17 }
 0x2d6   : > { %v1072_v18 = vpop.permute.xlu1 %1071 }
 0x2d7   : > { %1077 = vst.msk [vmem:[%s1509_s11 + $0x8] sm:$0xff] %vm1075_vm2, %v1072_v18 }
 0x2f4   : > { %v1139_v19 = vpop.permute.xlu0 %1138 }
 0x2f5   : > { %v1141_v22 = vadd.f32 %v1139_v19, %v1127_v21 }
 0x2f6   : > { %v1158_v23 = vpop.permute.xlu1 %1157 }
 0x2f7   : > { %1143 = vst.msk [vmem:[%s1771_s7] sm:$0x1] %vm1142_vm3, %v1141_v22  ;;  %v1160_v24 = vadd.f32 %v1158_v23, %v1144_v20 }
 0x2f8   : > { %v1081_v25 = vpop.permute.xlu0 %1080 }
 0x2f9   : > { %1161 = vst.msk [vmem:[%s1771_s7 + $0x1] sm:$0x1] %vm1142_vm3, %v1160_v24 }
 0x2fa   : > { %1087 = vst.msk [vmem:[%s1509_s11] sm:$0xff] %vm1086_vm9, %v1081_v25  ;;  %v1083_v26 = vpop.permute.xlu1 %1082 }
 0x2fb   : > { %1088 = vst.msk [vmem:[%s1509_s11 + $0x8] sm:$0xff] %vm1086_vm9, %v1083_v26 }
 0x2fc   : > { %v1174_v27 = vpop.permute.xlu0 %1173 }
 0x2fe   : > { %v1162_v28 = vld [vmem:[%s1771_s7] sm:$0x1]  ;;  %v1193_v29 = vpop.permute.xlu1 %1192 }
 0x2ff   : > { %v1176_v30 = vadd.f32 %v1174_v27, %v1162_v28 }
 0x300   : > { %v1179_v31 = vld [vmem:[%s1771_s7 + $0x1] sm:$0x1]  ;;  %v1092_v32 = vpop.permute.xlu0 %1091 }
 0x301   : > { %1178 = vst.msk [vmem:[%s1771_s7] sm:$0x1] %vm1177_vm15, %v1176_v30  ;;  %v1195_v33 = vadd.f32 %v1193_v29, %v1179_v31 }
 0x302   : > { %1098 = vst.msk [vmem:[%s1509_s11] sm:$0xff] %vm1097_vm0, %v1092_v32  ;;  %v1094_v34 = vpop.permute.xlu1 %1093 }
 0x303   : > { %1196 = vst.msk [vmem:[%s1771_s7 + $0x1] sm:$0x1] %vm1177_vm15, %v1195_v33 }
 0x304   : > { %1099 = vst.msk [vmem:[%s1509_s11 + $0x8] sm:$0xff] %vm1097_vm0, %v1094_v34 }
 0x305 PF: > { %s18_s24 = sadd.s32 1, %s1439_s24  }
 0x306   : > { %p15_p5 = scmp.ge.s32.totalorder %s18_s24, 4  }
 0x308   :  { %17 = sbr.rel (!%p15_p5) target bundleno = 1 (0x1), region = 92 }

</bundles_post_ra>
